<compile_context>
chip_gen: v5e
topology: v5e:2x2
jax: 0.10.0
libtpu: 0.0.40
codegen_flags: <defaults>
</compile_context>

<pallas_src>
from functools import partial

import jax
import jax.numpy as jnp
from jax import lax
from jax.experimental import pallas as pl
from jax.experimental.pallas import tpu as pltpu


_TARGET_TILE_ROWS = 512          # ~M rows per matmul tile (per grid step)
_VMEM_LIMIT_CACHE = None


def _vmem_limit_bytes():
    """Generation-aware scoped-VMEM budget (~3/4 of physical, capped)."""
    global _VMEM_LIMIT_CACHE
    if _VMEM_LIMIT_CACHE is None:
        try:
            cap = int(pltpu.get_tpu_info().vmem_capacity_bytes)
        except Exception:
            cap = 64 * 1024 * 1024           # safe fallback (v7x-sized)
        _VMEM_LIMIT_CACHE = max(32 * 1024 * 1024,
                                min((cap * 3) // 4, 96 * 1024 * 1024))
    return _VMEM_LIMIT_CACHE


def _pick_row_tile(Ho, row_pitch):
    """(TH, T): TH output image-rows per grid step, T steps, T*TH >= Ho."""
    th_target = max(1, _TARGET_TILE_ROWS // max(1, row_pitch))
    T = max(1, -(-Ho // th_target))
    TH = -(-Ho // T)
    return TH, T


# ---------------------------------------------------------------------------
# Pallas kernels
# ---------------------------------------------------------------------------
def matmul_shift_relu_kernel(x_ref, w_ref, shift_ref, o_ref):
    """Stage-1: one K = 9*Cin matmul over an im2col tile, + shift + ReLU.

    x_ref : (1, L, K)  bf16 im2col tile
    w_ref : (K, Cout)  bf16 (BN scale folded in)
    shift : (1, Cout)  f32
    o_ref : (1, L, Cout) bf16
    """
    acc = jnp.dot(x_ref[0], w_ref[...], preferred_element_type=jnp.float32)
    o_ref[0] = jnp.maximum(acc + shift_ref[...], 0.0).astype(o_ref.dtype)


def conv_bn_relu_kernel(ph_ref, w_ref, shift_ref, o_ref, *, Wcols, L_tile):
    """Fused 3x3/stride-2 conv + folded BN + ReLU for one row-tile.

    ph_ref : (1, 4, S_t, Cin) bf16 phase tile, S_t = (TH+2)*Wcols, Wcols=Wo+1.
             Phase (a,b) row i*Wcols+j holds x_padded[2(i0+i)+a, 2j+b].
    w_ref  : (9, Cin, Cout) bf16, tap-major (3*dh+dw), BN scale folded in.
    shift  : (1, Cout) f32.
    o_ref  : (1, L_tile, Cout) bf16; row m = i*Wcols+j is output (i0+i, j);
             rows with j == Wo are junk and dropped by the caller.
    """
    acc = None
    for dh in range(3):
        pa, qh = dh % 2, dh // 2
        for dw in range(3):
            pb, qw = dw % 2, dw // 2
            off = qh * Wcols + qw
            tap = ph_ref[0, 2 * pa + pb, pl.ds(off, L_tile), :]   # (L, Cin) bf16
            d = jnp.dot(tap, w_ref[3 * dh + dw],
                        preferred_element_type=jnp.float32)
            acc = d if acc is None else acc + d                   # MXU-chained
    o_ref[0] = jnp.maximum(acc + shift_ref[...], 0.0).astype(o_ref.dtype)


def pool_fc_kernel(ph_ref, w_ref, bias_ref, o_ref, *, Wcols, L_tile):
    """Fused MaxPool2d(3,2,1) + 1x1 conv (fc1, with bias) for one row-tile."""
    pooled = None
    for dh in range(3):
        pa, qh = dh % 2, dh // 2
        for dw in range(3):
            pb, qw = dw % 2, dw // 2
            off = qh * Wcols + qw
            tap = ph_ref[0, 2 * pa + pb, pl.ds(off, L_tile), :]   # (L, C) bf16
            pooled = tap if pooled is None else jnp.maximum(pooled, tap)
    y = jnp.dot(pooled, w_ref[...], preferred_element_type=jnp.float32)
    o_ref[0] = (y + bias_ref[...]).astype(o_ref.dtype)


# ---------------------------------------------------------------------------
# Activation layout builders (single fused XLA pass; emit bf16)
# ---------------------------------------------------------------------------
def _im2col_s2_tiles(x_nhwc, Ho, Wo, TH, T):
    """Stage-1 im2col: (N,H,W,C) -> (N*T, TH*Wo, 9*C) bf16 for 3x3/s2/p1."""
    N, H, W, C = x_nhwc.shape
    Ho_pad = T * TH
    Hp, Wp = 2 * Ho_pad + 1, 2 * Wo + 1
    xp = jnp.pad(x_nhwc.astype(jnp.bfloat16),
                 ((0, 0), (1, Hp - H - 1), (1, Wp - W - 1), (0, 0)))
    taps = []
    for dh in range(3):
        for dw in range(3):
            taps.append(xp[:, dh:dh + 2 * Ho_pad:2, dw:dw + 2 * Wo:2, :])
    col = jnp.concatenate(taps, axis=-1)          # (N, Ho_pad, Wo, 9C)
    return col.reshape(N * T, TH * Wo, 9 * C)


def _to_phase_tiles(x_nhwc, Wo, TH, T, pad_value=0.0):
    """(N,H,W,C) -> (N*T, 4, (TH+2)*(Wo+1), C) phase tiles with 2-row halo.

    tile[n*T+t, 2a+b, i*(Wo+1)+j, c] == x_padded[n, 2*(t*TH+i)+a, 2j+b, c]
    """
    N, H, W, C = x_nhwc.shape
    Ho_pad = T * TH
    Hrows, Wcols = Ho_pad + 2, Wo + 1
    Hp, Wp = 2 * Hrows, 2 * Wcols
    xp = jnp.pad(x_nhwc, ((0, 0), (1, Hp - H - 1), (1, Wp - W - 1), (0, 0)),
                 constant_values=pad_value)
    ph = xp.reshape(N, Hrows, 2, Wcols, 2, C).transpose(0, 2, 4, 1, 3, 5)
    tiles = jnp.stack([ph[:, :, :, t * TH:t * TH + TH + 2] for t in range(T)],
                      axis=1)                     # (N, T, 2, 2, TH+2, Wcols, C)
    return tiles.reshape(N * T, 4, (TH + 2) * Wcols, C)


# ---------------------------------------------------------------------------
# Stage wrappers (pallas_call plumbing)
# ---------------------------------------------------------------------------
def conv1_stage(x_nhwc, w_col, shift):
    """First conv (small Cin): im2col + single-matmul kernel."""
    N, H, W, C = x_nhwc.shape
    Ho, Wo = (H - 1) // 2 + 1, (W - 1) // 2 + 1
    TH, T = _pick_row_tile(Ho, Wo)
    L_tile, K = TH * Wo, 9 * C
    cout = w_col.shape[-1]
    x_col = _im2col_s2_tiles(x_nhwc, Ho, Wo, TH, T)
    sh = shift.reshape(1, cout)

    out = pl.pallas_call(
        matmul_shift_relu_kernel,
        out_shape=jax.ShapeDtypeStruct((N * T, L_tile, cout), jnp.bfloat16),
        grid=(N * T,),
        in_specs=[
            pl.BlockSpec((1, L_tile, K), lambda m: (m, 0, 0)),
            pl.BlockSpec((K, cout), lambda m: (0, 0)),
            pl.BlockSpec((1, cout), lambda m: (0, 0)),
        ],
        out_specs=pl.BlockSpec((1, L_tile, cout), lambda m: (m, 0, 0)),
        compiler_params=pltpu.CompilerParams(
            dimension_semantics=("parallel",),
            vmem_limit_bytes=_vmem_limit_bytes(),
        ),
    )(x_col, w_col, sh)
    return out.reshape(N, T * TH, Wo, cout)[:, :Ho, :, :]


def conv_bn_relu_stage(x_nhwc, w9, shift):
    """3x3/s2 conv + folded BN + ReLU via the phase decomposition."""
    N, H, W, cin = x_nhwc.shape
    Ho, Wo = (H - 1) // 2 + 1, (W - 1) // 2 + 1
    Wcols = Wo + 1
    TH, T = _pick_row_tile(Ho, Wcols)
    L_tile, S_t = TH * Wcols, (TH + 2) * Wcols
    cout = w9.shape[-1]
    ph = _to_phase_tiles(x_nhwc, Wo, TH, T, 0.0)
    sh = shift.reshape(1, cout)

    out = pl.pallas_call(
        partial(conv_bn_relu_kernel, Wcols=Wcols, L_tile=L_tile),
        out_shape=jax.ShapeDtypeStruct((N * T, L_tile, cout), jnp.bfloat16),
        grid=(N * T,),
        in_specs=[
            pl.BlockSpec((1, 4, S_t, cin), lambda m: (m, 0, 0, 0)),
            pl.BlockSpec((9, cin, cout), lambda m: (0, 0, 0)),   # VMEM-resident
            pl.BlockSpec((1, cout), lambda m: (0, 0)),
        ],
        out_specs=pl.BlockSpec((1, L_tile, cout), lambda m: (m, 0, 0)),
        compiler_params=pltpu.CompilerParams(
            dimension_semantics=("parallel",),
            vmem_limit_bytes=_vmem_limit_bytes(),
        ),
    )(ph, w9, sh)
    # Drop junk j == Wo column and padded rows; under jit this slice fuses
    # with the next stage's pad/transpose.
    return out.reshape(N, T * TH, Wcols, cout)[:, :Ho, :Wo, :]


def pool_fc_stage(x_nhwc, fc_w, fc_b):
    """MaxPool2d(3,2,1) + fc1 (1x1 conv + bias).  Pool pads with 0 (inputs
    are post-ReLU, so the max is unchanged and no huge sentinels exist)."""
    N, H, W, cin = x_nhwc.shape
    Ho, Wo = (H - 1) // 2 + 1, (W - 1) // 2 + 1
    Wcols = Wo + 1
    TH, T = _pick_row_tile(Ho, Wcols)
    L_tile, S_t = TH * Wcols, (TH + 2) * Wcols
    embed = fc_w.shape[-1]
    ph = _to_phase_tiles(x_nhwc, Wo, TH, T, 0.0)
    b = fc_b.reshape(1, embed)

    out = pl.pallas_call(
        partial(pool_fc_kernel, Wcols=Wcols, L_tile=L_tile),
        out_shape=jax.ShapeDtypeStruct((N * T, L_tile, embed), jnp.float32),
        grid=(N * T,),
        in_specs=[
            pl.BlockSpec((1, 4, S_t, cin), lambda m: (m, 0, 0, 0)),
            pl.BlockSpec((cin, embed), lambda m: (0, 0)),
            pl.BlockSpec((1, embed), lambda m: (0, 0)),
        ],
        out_specs=pl.BlockSpec((1, L_tile, embed), lambda m: (m, 0, 0)),
        compiler_params=pltpu.CompilerParams(
            dimension_semantics=("parallel",),
            vmem_limit_bytes=_vmem_limit_bytes(),
        ),
    )(ph, fc_w, b)
    return out.reshape(N, T * TH, Wcols, embed)[:, :Ho, :Wo, :]


# ---------------------------------------------------------------------------
# Parameters: raw (torch-equivalent) init + one-time pre-packing
# ---------------------------------------------------------------------------
def init_params(key, in_c, inplanes, embed_dim):
    keys = jax.random.split(key, 16)
    eps = 1e-5
    convs = []
    cin = in_c
    k_i = 0
    for _ in range(3):
        w = 0.1 * jax.random.normal(keys[k_i], (inplanes, cin, 3, 3), jnp.float32)
        gamma = 1.0 + 0.1 * jax.random.normal(keys[k_i + 1], (inplanes,), jnp.float32)
        beta = 0.05 * jax.random.normal(keys[k_i + 2], (inplanes,), jnp.float32)
        mean = 0.05 * jax.random.normal(keys[k_i + 3], (inplanes,), jnp.float32)
        var = 0.5 + jax.random.uniform(keys[k_i + 4], (inplanes,), jnp.float32)
        scale = gamma / jnp.sqrt(var + eps)      # eval-mode BN folded
        shift = beta - mean * scale
        convs.append((w, scale, shift))
        cin = inplanes
        k_i += 5
    fc_w = 0.1 * jax.random.normal(keys[14], (embed_dim, inplanes, 1, 1), jnp.float32)
    fc_b = 0.05 * jax.random.normal(keys[15], (embed_dim,), jnp.float32)
    return {"convs": convs, "fc_w": fc_w, "fc_b": fc_b}


def pack_params(params):
    """One-time prepack: transpose to tap-major, fold BN scale into bf16
    weights (epilogue becomes +shift, ReLU).  Called once, outside the
    per-forward trace."""
    packed = []
    for idx, (w_oihw, scale, shift) in enumerate(params["convs"]):
        cout, cin = w_oihw.shape[0], w_oihw.shape[1]
        wt = jnp.transpose(w_oihw, (2, 3, 1, 0)).reshape(9, cin, cout)
        wt = (wt * scale[None, None, :]).astype(jnp.bfloat16)
        if idx == 0:
            wt = wt.reshape(9 * cin, cout)       # stage-1 im2col layout (K = 9*Cin)
        packed.append((wt, shift.astype(jnp.float32)))
    fc_w = jnp.transpose(params["fc_w"][:, :, 0, 0], (1, 0)).astype(jnp.bfloat16)
    fc_b = params["fc_b"].astype(jnp.float32)
    return {"convs": packed, "fc_w": fc_w, "fc_b": fc_b}


# ---------------------------------------------------------------------------
# ConvStem forward (Pallas)
# ---------------------------------------------------------------------------
@jax.jit
def conv_stem_forward(x_nchw, packed):
    x = jnp.transpose(x_nchw, (0, 2, 3, 1))            # NCHW -> NHWC
    (w1, sh1), (w2, sh2), (w3, sh3) = packed["convs"]
    x = conv1_stage(x, w1, sh1)
    x = conv_bn_relu_stage(x, w2, sh2)
    x = conv_bn_relu_stage(x, w3, sh3)
    y = pool_fc_stage(x, packed["fc_w"], packed["fc_b"])
    return jnp.transpose(y, (0, 3, 1, 2))              # NHWC -> NCHW


# ---------------------------------------------------------------------------
# Pure-JAX f32 reference (same eval-mode BN semantics) for verification
# ---------------------------------------------------------------------------
@jax.jit
def conv_stem_reference(x_nchw, params):
    dn = ("NCHW", "OIHW", "NCHW")
    x = x_nchw
    for (w, scale, shift) in params["convs"]:
        x = lax.conv_general_dilated(x, w, (2, 2), [(1, 1), (1, 1)],
                                     dimension_numbers=dn)
        x = x * scale[None, :, None, None] + shift[None, :, None, None]
        x = jnp.maximum(x, 0.0)
    x = lax.reduce_window(x, -jnp.inf, lax.max,
                          (1, 1, 3, 3), (1, 1, 2, 2),
                          [(0, 0), (0, 0), (1, 1), (1, 1)])
    x = lax.conv_general_dilated(x, params["fc_w"], (1, 1), [(0, 0), (0, 0)],
                                 dimension_numbers=dn)
    return x + params["fc_b"][None, :, None, None]


# ---------------------------------------------------------------------------
if __name__ == "__main__":
    key = jax.random.PRNGKey(0)
    k_x, k_p, k_x2 = jax.random.split(key, 3)

    # Small shapes consistent with the module (in_c, inplanes, embed_dim scaled down)
    batch, in_c, inplanes, embed_dim = 2, 4, 8, 32
    params = init_params(k_p, in_c, inplanes, embed_dim)
    packed = pack_params(params)

    # Two spatial sizes: 32 (single row-tile per stage) and 96 (exercises the
    # multi-tile / halo / padded-row paths).
    for spatial, kx in ((32, k_x), (96, k_x2)):
        x = jax.random.normal(kx, (batch, in_c, spatial, spatial), jnp.float32)
        out = jax.block_until_ready(conv_stem_forward(x, packed))
        ref = jax.block_until_ready(conv_stem_reference(x, params))
        assert out.shape == ref.shape, (out.shape, ref.shape)
        # bf16 weights + bf16 inter-stage activations vs all-f32 reference:
        # tightened from 5e-2 to 3e-2 (still catches any layout/indexing bug).
        assert bool(jnp.allclose(out, ref, rtol=3e-2, atol=3e-2)), \
            f"mismatch vs reference at spatial={spatial}"

    print("KERNEL_OK")
</pallas_src>

<mosaic_0001>
module attributes {stable_mosaic.version = 11 : i64} {
  func.func @matmul_shift_relu_kernel(%arg0: i32, %arg1: memref<1x256x36xbf16, #tpu.memory_space<vmem>>, %arg2: memref<36x8xbf16, #tpu.memory_space<vmem>>, %arg3: memref<1x8xf32, #tpu.memory_space<vmem>>, %arg4: memref<1x256x8xbf16, #tpu.memory_space<vmem>>) attributes {dimension_semantics = [#tpu.dimension_semantics<parallel>], iteration_bounds = array<i64: 2>, scalar_prefetch = 0 : i64, scratch_operands = 0 : i64, tpu.core_type = #tpu.core_type<tc>, window_params = [{transform_indices = @transform_0, window_bounds = array<i64: 1, 256, 36>}, {pipeline_mode = #tpu.pipeline_mode<synchronous>, transform_indices = @transform_1, window_bounds = array<i64: 36, 8>}, {pipeline_mode = #tpu.pipeline_mode<synchronous>, transform_indices = @transform_2, window_bounds = array<i64: 1, 8>}, {transform_indices = @transform_3, window_bounds = array<i64: 1, 256, 8>}]} {
    %c0 = arith.constant 0 : index
    %c0_0 = arith.constant 0 : index
    %c0_1 = arith.constant 0 : index
    %0 = vector.load %arg1[%c0, %c0_0, %c0_1] : memref<1x256x36xbf16, #tpu.memory_space<vmem>>, vector<1x256x36xbf16>
    %1 = vector.shape_cast %0 : vector<1x256x36xbf16> to vector<256x36xbf16>
    %c0_2 = arith.constant 0 : index
    %c0_3 = arith.constant 0 : index
    %2 = vector.load %arg2[%c0_2, %c0_3] : memref<36x8xbf16, #tpu.memory_space<vmem>>, vector<36x8xbf16>
    %cst = arith.constant dense<0.000000e+00> : vector<256x8xf32>
    %3 = tpu.matmul %1, %2, %cst {dimension_numbers = #tpu.dot_dimension_numbers<[1], [0], [0], [1], [0, 0, 1, 1], [], []>} : vector<256x36xbf16>, vector<36x8xbf16>, vector<256x8xf32> -> vector<256x8xf32>
    %c0_4 = arith.constant 0 : index
    %c0_5 = arith.constant 0 : index
    %4 = vector.load %arg3[%c0_4, %c0_5] : memref<1x8xf32, #tpu.memory_space<vmem>>, vector<1x8xf32>
    %5 = vector.broadcast %4 : vector<1x8xf32> to vector<256x8xf32>
    %6 = arith.addf %3, %5 : vector<256x8xf32>
    %cst_6 = arith.constant 0.000000e+00 : f32
    %7 = vector.broadcast %cst_6 : f32 to vector<256x8xf32>
    %8 = arith.maximumf %6, %7 : vector<256x8xf32>
    %9 = arith.truncf %8 : vector<256x8xf32> to vector<256x8xbf16>
    %c0_7 = arith.constant 0 : index
    %c0_8 = arith.constant 0 : index
    %c0_9 = arith.constant 0 : index
    %10 = vector.load %arg4[%c0_7, %c0_8, %c0_9] : memref<1x256x8xbf16, #tpu.memory_space<vmem>>, vector<1x256x8xbf16>
    %11 = vector.shape_cast %10 : vector<1x256x8xbf16> to vector<256x8xbf16>
    %12 = vector.shape_cast %9 : vector<256x8xbf16> to vector<1x256x8xbf16>
    tpu.vector_store %arg4[%c0_7, %c0_8, %c0_9], %12 {strides = array<i32>} : memref<1x256x8xbf16, #tpu.memory_space<vmem>>, vector<1x256x8xbf16>,
    return
  }
  func.func @transform_0(%arg0: i32) -> (i32, i32, i32) {
    %c0_i32 = arith.constant 0 : i32
    %c0_i32_0 = arith.constant 0 : i32
    %c0_i32_1 = arith.constant 0 : i32
    return %arg0, %c0_i32, %c0_i32_0 : i32, i32, i32
  }
  func.func @transform_1(%arg0: i32) -> (i32, i32) {
    %c0_i32 = arith.constant 0 : i32
    %c0_i32_0 = arith.constant 0 : i32
    %c0_i32_1 = arith.constant 0 : i32
    return %c0_i32, %c0_i32_0 : i32, i32
  }
  func.func @transform_2(%arg0: i32) -> (i32, i32) {
    %c0_i32 = arith.constant 0 : i32
    %c0_i32_0 = arith.constant 0 : i32
    %c0_i32_1 = arith.constant 0 : i32
    return %c0_i32, %c0_i32_0 : i32, i32
  }
  func.func @transform_3(%arg0: i32) -> (i32, i32, i32) {
    %c0_i32 = arith.constant 0 : i32
    %c0_i32_0 = arith.constant 0 : i32
    %c0_i32_1 = arith.constant 0 : i32
    return %arg0, %c0_i32, %c0_i32_0 : i32, i32, i32
  }
}

module attributes {stable_mosaic.version = 11 : i64} {
  func.func @conv_bn_relu_kernel(%arg0: i32, %arg1: memref<1x4x90x8xbf16, #tpu.memory_space<vmem>>, %arg2: memref<9x8x8xbf16, #tpu.memory_space<vmem>>, %arg3: memref<1x8xf32, #tpu.memory_space<vmem>>, %arg4: memref<1x72x8xbf16, #tpu.memory_space<vmem>>) attributes {dimension_semantics = [#tpu.dimension_semantics<parallel>], iteration_bounds = array<i64: 2>, scalar_prefetch = 0 : i64, scratch_operands = 0 : i64, tpu.core_type = #tpu.core_type<tc>, window_params = [{transform_indices = @transform_0, window_bounds = array<i64: 1, 4, 90, 8>}, {pipeline_mode = #tpu.pipeline_mode<synchronous>, transform_indices = @transform_1, window_bounds = array<i64: 9, 8, 8>}, {pipeline_mode = #tpu.pipeline_mode<synchronous>, transform_indices = @transform_2, window_bounds = array<i64: 1, 8>}, {transform_indices = @transform_3, window_bounds = array<i64: 1, 72, 8>}]} {
    %c0 = arith.constant 0 : index
    %c0_0 = arith.constant 0 : index
    %c0_1 = arith.constant 0 : index
    %c0_2 = arith.constant 0 : index
    %0 = vector.load %arg1[%c0, %c0_0, %c0_1, %c0_2] : memref<1x4x90x8xbf16, #tpu.memory_space<vmem>>, vector<1x1x72x8xbf16>
    %1 = vector.shape_cast %0 : vector<1x1x72x8xbf16> to vector<72x8xbf16>
    %c0_3 = arith.constant 0 : index
    %c0_4 = arith.constant 0 : index
    %c0_5 = arith.constant 0 : index
    %2 = vector.load %arg2[%c0_3, %c0_4, %c0_5] : memref<9x8x8xbf16, #tpu.memory_space<vmem>>, vector<1x8x8xbf16>
    %3 = vector.shape_cast %2 : vector<1x8x8xbf16> to vector<8x8xbf16>
    %cst = arith.constant dense<0.000000e+00> : vector<72x8xf32>
    %4 = tpu.matmul %1, %3, %cst {dimension_numbers = #tpu.dot_dimension_numbers<[1], [0], [0], [1], [0, 0, 1, 1], [], []>} : vector<72x8xbf16>, vector<8x8xbf16>, vector<72x8xf32> -> vector<72x8xf32>
    %c0_6 = arith.constant 0 : index
    %c1 = arith.constant 1 : index
    %c0_7 = arith.constant 0 : index
    %c0_8 = arith.constant 0 : index
    %5 = vector.load %arg1[%c0_6, %c1, %c0_7, %c0_8] : memref<1x4x90x8xbf16, #tpu.memory_space<vmem>>, vector<1x1x72x8xbf16>
    %6 = vector.shape_cast %5 : vector<1x1x72x8xbf16> to vector<72x8xbf16>
    %c1_9 = arith.constant 1 : index
    %c0_10 = arith.constant 0 : index
    %c0_11 = arith.constant 0 : index
    %7 = vector.load %arg2[%c1_9, %c0_10, %c0_11] : memref<9x8x8xbf16, #tpu.memory_space<vmem>>, vector<1x8x8xbf16>
    %8 = vector.shape_cast %7 : vector<1x8x8xbf16> to vector<8x8xbf16>
    %cst_12 = arith.constant dense<0.000000e+00> : vector<72x8xf32>
    %9 = tpu.matmul %6, %8, %cst_12 {dimension_numbers = #tpu.dot_dimension_numbers<[1], [0], [0], [1], [0, 0, 1, 1], [], []>} : vector<72x8xbf16>, vector<8x8xbf16>, vector<72x8xf32> -> vector<72x8xf32>
    %10 = arith.addf %4, %9 : vector<72x8xf32>
    %c0_13 = arith.constant 0 : index
    %c0_14 = arith.constant 0 : index
    %c1_15 = arith.constant 1 : index
    %c0_16 = arith.constant 0 : index
    %11 = vector.load %arg1[%c0_13, %c0_14, %c1_15, %c0_16] : memref<1x4x90x8xbf16, #tpu.memory_space<vmem>>, vector<1x1x72x8xbf16>
    %12 = vector.shape_cast %11 : vector<1x1x72x8xbf16> to vector<72x8xbf16>
    %c2 = arith.constant 2 : index
    %c0_17 = arith.constant 0 : index
    %c0_18 = arith.constant 0 : index
    %13 = vector.load %arg2[%c2, %c0_17, %c0_18] : memref<9x8x8xbf16, #tpu.memory_space<vmem>>, vector<1x8x8xbf16>
    %14 = vector.shape_cast %13 : vector<1x8x8xbf16> to vector<8x8xbf16>
    %cst_19 = arith.constant dense<0.000000e+00> : vector<72x8xf32>
    %15 = tpu.matmul %12, %14, %cst_19 {dimension_numbers = #tpu.dot_dimension_numbers<[1], [0], [0], [1], [0, 0, 1, 1], [], []>} : vector<72x8xbf16>, vector<8x8xbf16>, vector<72x8xf32> -> vector<72x8xf32>
    %16 = arith.addf %10, %15 : vector<72x8xf32>
    %c0_20 = arith.constant 0 : index
    %c2_21 = arith.constant 2 : index
    %c0_22 = arith.constant 0 : index
    %c0_23 = arith.constant 0 : index
    %17 = vector.load %arg1[%c0_20, %c2_21, %c0_22, %c0_23] : memref<1x4x90x8xbf16, #tpu.memory_space<vmem>>, vector<1x1x72x8xbf16>
    %18 = vector.shape_cast %17 : vector<1x1x72x8xbf16> to vector<72x8xbf16>
    %c3 = arith.constant 3 : index
    %c0_24 = arith.constant 0 : index
    %c0_25 = arith.constant 0 : index
    %19 = vector.load %arg2[%c3, %c0_24, %c0_25] : memref<9x8x8xbf16, #tpu.memory_space<vmem>>, vector<1x8x8xbf16>
    %20 = vector.shape_cast %19 : vector<1x8x8xbf16> to vector<8x8xbf16>
    %cst_26 = arith.constant dense<0.000000e+00> : vector<72x8xf32>
    %21 = tpu.matmul %18, %20, %cst_26 {dimension_numbers = #tpu.dot_dimension_numbers<[1], [0], [0], [1], [0, 0, 1, 1], [], []>} : vector<72x8xbf16>, vector<8x8xbf16>, vector<72x8xf32> -> vector<72x8xf32>
    %22 = arith.addf %16, %21 : vector<72x8xf32>
    %c0_27 = arith.constant 0 : index
    %c3_28 = arith.constant 3 : index
    %c0_29 = arith.constant 0 : index
    %c0_30 = arith.constant 0 : index
    %23 = vector.load %arg1[%c0_27, %c3_28, %c0_29, %c0_30] : memref<1x4x90x8xbf16, #tpu.memory_space<vmem>>, vector<1x1x72x8xbf16>
    %24 = vector.shape_cast %23 : vector<1x1x72x8xbf16> to vector<72x8xbf16>
    %c4 = arith.constant 4 : index
    %c0_31 = arith.constant 0 : index
    %c0_32 = arith.constant 0 : index
    %25 = vector.load %arg2[%c4, %c0_31, %c0_32] : memref<9x8x8xbf16, #tpu.memory_space<vmem>>, vector<1x8x8xbf16>
    %26 = vector.shape_cast %25 : vector<1x8x8xbf16> to vector<8x8xbf16>
    %cst_33 = arith.constant dense<0.000000e+00> : vector<72x8xf32>
    %27 = tpu.matmul %24, %26, %cst_33 {dimension_numbers = #tpu.dot_dimension_numbers<[1], [0], [0], [1], [0, 0, 1, 1], [], []>} : vector<72x8xbf16>, vector<8x8xbf16>, vector<72x8xf32> -> vector<72x8xf32>
    %28 = arith.addf %22, %27 : vector<72x8xf32>
    %c0_34 = arith.constant 0 : index
    %c2_35 = arith.constant 2 : index
    %c1_36 = arith.constant 1 : index
    %c0_37 = arith.constant 0 : index
    %29 = vector.load %arg1[%c0_34, %c2_35, %c1_36, %c0_37] : memref<1x4x90x8xbf16, #tpu.memory_space<vmem>>, vector<1x1x72x8xbf16>
    %30 = vector.shape_cast %29 : vector<1x1x72x8xbf16> to vector<72x8xbf16>
    %c5 = arith.constant 5 : index
    %c0_38 = arith.constant 0 : index
    %c0_39 = arith.constant 0 : index
    %31 = vector.load %arg2[%c5, %c0_38, %c0_39] : memref<9x8x8xbf16, #tpu.memory_space<vmem>>, vector<1x8x8xbf16>
    %32 = vector.shape_cast %31 : vector<1x8x8xbf16> to vector<8x8xbf16>
    %cst_40 = arith.constant dense<0.000000e+00> : vector<72x8xf32>
    %33 = tpu.matmul %30, %32, %cst_40 {dimension_numbers = #tpu.dot_dimension_numbers<[1], [0], [0], [1], [0, 0, 1, 1], [], []>} : vector<72x8xbf16>, vector<8x8xbf16>, vector<72x8xf32> -> vector<72x8xf32>
    %34 = arith.addf %28, %33 : vector<72x8xf32>
    %c0_41 = arith.constant 0 : index
    %c0_42 = arith.constant 0 : index
    %c9 = arith.constant 9 : index
    %c0_43 = arith.constant 0 : index
    %35 = vector.load %arg1[%c0_41, %c0_42, %c9, %c0_43] : memref<1x4x90x8xbf16, #tpu.memory_space<vmem>>, vector<1x1x72x8xbf16>
    %36 = vector.shape_cast %35 : vector<1x1x72x8xbf16> to vector<72x8xbf16>
    %c6 = arith.constant 6 : index
    %c0_44 = arith.constant 0 : index
    %c0_45 = arith.constant 0 : index
    %37 = vector.load %arg2[%c6, %c0_44, %c0_45] : memref<9x8x8xbf16, #tpu.memory_space<vmem>>, vector<1x8x8xbf16>
    %38 = vector.shape_cast %37 : vector<1x8x8xbf16> to vector<8x8xbf16>
    %cst_46 = arith.constant dense<0.000000e+00> : vector<72x8xf32>
    %39 = tpu.matmul %36, %38, %cst_46 {dimension_numbers = #tpu.dot_dimension_numbers<[1], [0], [0], [1], [0, 0, 1, 1], [], []>} : vector<72x8xbf16>, vector<8x8xbf16>, vector<72x8xf32> -> vector<72x8xf32>
    %40 = arith.addf %34, %39 : vector<72x8xf32>
    %c0_47 = arith.constant 0 : index
    %c1_48 = arith.constant 1 : index
    %c9_49 = arith.constant 9 : index
    %c0_50 = arith.constant 0 : index
    %41 = vector.load %arg1[%c0_47, %c1_48, %c9_49, %c0_50] : memref<1x4x90x8xbf16, #tpu.memory_space<vmem>>, vector<1x1x72x8xbf16>
    %42 = vector.shape_cast %41 : vector<1x1x72x8xbf16> to vector<72x8xbf16>
    %c7 = arith.constant 7 : index
    %c0_51 = arith.constant 0 : index
    %c0_52 = arith.constant 0 : index
    %43 = vector.load %arg2[%c7, %c0_51, %c0_52] : memref<9x8x8xbf16, #tpu.memory_space<vmem>>, vector<1x8x8xbf16>
    %44 = vector.shape_cast %43 : vector<1x8x8xbf16> to vector<8x8xbf16>
    %cst_53 = arith.constant dense<0.000000e+00> : vector<72x8xf32>
    %45 = tpu.matmul %42, %44, %cst_53 {dimension_numbers = #tpu.dot_dimension_numbers<[1], [0], [0], [1], [0, 0, 1, 1], [], []>} : vector<72x8xbf16>, vector<8x8xbf16>, vector<72x8xf32> -> vector<72x8xf32>
    %46 = arith.addf %40, %45 : vector<72x8xf32>
    %c0_54 = arith.constant 0 : index
    %c0_55 = arith.constant 0 : index
    %c10 = arith.constant 10 : index
    %c0_56 = arith.constant 0 : index
    %47 = vector.load %arg1[%c0_54, %c0_55, %c10, %c0_56] : memref<1x4x90x8xbf16, #tpu.memory_space<vmem>>, vector<1x1x72x8xbf16>
    %48 = vector.shape_cast %47 : vector<1x1x72x8xbf16> to vector<72x8xbf16>
    %c8 = arith.constant 8 : index
    %c0_57 = arith.constant 0 : index
    %c0_58 = arith.constant 0 : index
    %49 = vector.load %arg2[%c8, %c0_57, %c0_58] : memref<9x8x8xbf16, #tpu.memory_space<vmem>>, vector<1x8x8xbf16>
    %50 = vector.shape_cast %49 : vector<1x8x8xbf16> to vector<8x8xbf16>
    %cst_59 = arith.constant dense<0.000000e+00> : vector<72x8xf32>
    %51 = tpu.matmul %48, %50, %cst_59 {dimension_numbers = #tpu.dot_dimension_numbers<[1], [0], [0], [1], [0, 0, 1, 1], [], []>} : vector<72x8xbf16>, vector<8x8xbf16>, vector<72x8xf32> -> vector<72x8xf32>
    %52 = arith.addf %46, %51 : vector<72x8xf32>
    %c0_60 = arith.constant 0 : index
    %c0_61 = arith.constant 0 : index
    %53 = vector.load %arg3[%c0_60, %c0_61] : memref<1x8xf32, #tpu.memory_space<vmem>>, vector<1x8xf32>
    %54 = vector.broadcast %53 : vector<1x8xf32> to vector<72x8xf32>
    %55 = arith.addf %52, %54 : vector<72x8xf32>
    %cst_62 = arith.constant 0.000000e+00 : f32
    %56 = vector.broadcast %cst_62 : f32 to vector<72x8xf32>
    %57 = arith.maximumf %55, %56 : vector<72x8xf32>
    %58 = arith.truncf %57 : vector<72x8xf32> to vector<72x8xbf16>
    %c0_63 = arith.constant 0 : index
    %c0_64 = arith.constant 0 : index
    %c0_65 = arith.constant 0 : index
    %59 = vector.load %arg4[%c0_63, %c0_64, %c0_65] : memref<1x72x8xbf16, #tpu.memory_space<vmem>>, vector<1x72x8xbf16>
    %60 = vector.shape_cast %59 : vector<1x72x8xbf16> to vector<72x8xbf16>
    %61 = vector.shape_cast %58 : vector<72x8xbf16> to vector<1x72x8xbf16>
    tpu.vector_store %arg4[%c0_63, %c0_64, %c0_65], %61 {strides = array<i32>} : memref<1x72x8xbf16, #tpu.memory_space<vmem>>, vector<1x72x8xbf16>,
    return
  }
  func.func @transform_0(%arg0: i32) -> (i32, i32, i32, i32) {
    %c0_i32 = arith.constant 0 : i32
    %c0_i32_0 = arith.constant 0 : i32
    %c0_i32_1 = arith.constant 0 : i32
    %c0_i32_2 = arith.constant 0 : i32
    return %arg0, %c0_i32, %c0_i32_0, %c0_i32_1 : i32, i32, i32, i32
  }
  func.func @transform_1(%arg0: i32) -> (i32, i32, i32) {
    %c0_i32 = arith.constant 0 : i32
    %c0_i32_0 = arith.constant 0 : i32
    %c0_i32_1 = arith.constant 0 : i32
    %c0_i32_2 = arith.constant 0 : i32
    return %c0_i32, %c0_i32_0, %c0_i32_1 : i32, i32, i32
  }
  func.func @transform_2(%arg0: i32) -> (i32, i32) {
    %c0_i32 = arith.constant 0 : i32
    %c0_i32_0 = arith.constant 0 : i32
    %c0_i32_1 = arith.constant 0 : i32
    return %c0_i32, %c0_i32_0 : i32, i32
  }
  func.func @transform_3(%arg0: i32) -> (i32, i32, i32) {
    %c0_i32 = arith.constant 0 : i32
    %c0_i32_0 = arith.constant 0 : i32
    %c0_i32_1 = arith.constant 0 : i32
    return %arg0, %c0_i32, %c0_i32_0 : i32, i32, i32
  }
}

module attributes {stable_mosaic.version = 11 : i64} {
  func.func @conv_bn_relu_kernel(%arg0: i32, %arg1: memref<1x4x30x8xbf16, #tpu.memory_space<vmem>>, %arg2: memref<9x8x8xbf16, #tpu.memory_space<vmem>>, %arg3: memref<1x8xf32, #tpu.memory_space<vmem>>, %arg4: memref<1x20x8xbf16, #tpu.memory_space<vmem>>) attributes {dimension_semantics = [#tpu.dimension_semantics<parallel>], iteration_bounds = array<i64: 2>, scalar_prefetch = 0 : i64, scratch_operands = 0 : i64, tpu.core_type = #tpu.core_type<tc>, window_params = [{transform_indices = @transform_0, window_bounds = array<i64: 1, 4, 30, 8>}, {pipeline_mode = #tpu.pipeline_mode<synchronous>, transform_indices = @transform_1, window_bounds = array<i64: 9, 8, 8>}, {pipeline_mode = #tpu.pipeline_mode<synchronous>, transform_indices = @transform_2, window_bounds = array<i64: 1, 8>}, {transform_indices = @transform_3, window_bounds = array<i64: 1, 20, 8>}]} {
    %c0 = arith.constant 0 : index
    %c0_0 = arith.constant 0 : index
    %c0_1 = arith.constant 0 : index
    %c0_2 = arith.constant 0 : index
    %0 = vector.load %arg1[%c0, %c0_0, %c0_1, %c0_2] : memref<1x4x30x8xbf16, #tpu.memory_space<vmem>>, vector<1x1x20x8xbf16>
    %1 = vector.shape_cast %0 : vector<1x1x20x8xbf16> to vector<20x8xbf16>
    %c0_3 = arith.constant 0 : index
    %c0_4 = arith.constant 0 : index
    %c0_5 = arith.constant 0 : index
    %2 = vector.load %arg2[%c0_3, %c0_4, %c0_5] : memref<9x8x8xbf16, #tpu.memory_space<vmem>>, vector<1x8x8xbf16>
    %3 = vector.shape_cast %2 : vector<1x8x8xbf16> to vector<8x8xbf16>
    %cst = arith.constant dense<0.000000e+00> : vector<20x8xf32>
    %4 = tpu.matmul %1, %3, %cst {dimension_numbers = #tpu.dot_dimension_numbers<[1], [0], [0], [1], [0, 0, 1, 1], [], []>} : vector<20x8xbf16>, vector<8x8xbf16>, vector<20x8xf32> -> vector<20x8xf32>
    %c0_6 = arith.constant 0 : index
    %c1 = arith.constant 1 : index
    %c0_7 = arith.constant 0 : index
    %c0_8 = arith.constant 0 : index
    %5 = vector.load %arg1[%c0_6, %c1, %c0_7, %c0_8] : memref<1x4x30x8xbf16, #tpu.memory_space<vmem>>, vector<1x1x20x8xbf16>
    %6 = vector.shape_cast %5 : vector<1x1x20x8xbf16> to vector<20x8xbf16>
    %c1_9 = arith.constant 1 : index
    %c0_10 = arith.constant 0 : index
    %c0_11 = arith.constant 0 : index
    %7 = vector.load %arg2[%c1_9, %c0_10, %c0_11] : memref<9x8x8xbf16, #tpu.memory_space<vmem>>, vector<1x8x8xbf16>
    %8 = vector.shape_cast %7 : vector<1x8x8xbf16> to vector<8x8xbf16>
    %cst_12 = arith.constant dense<0.000000e+00> : vector<20x8xf32>
    %9 = tpu.matmul %6, %8, %cst_12 {dimension_numbers = #tpu.dot_dimension_numbers<[1], [0], [0], [1], [0, 0, 1, 1], [], []>} : vector<20x8xbf16>, vector<8x8xbf16>, vector<20x8xf32> -> vector<20x8xf32>
    %10 = arith.addf %4, %9 : vector<20x8xf32>
    %c0_13 = arith.constant 0 : index
    %c0_14 = arith.constant 0 : index
    %c1_15 = arith.constant 1 : index
    %c0_16 = arith.constant 0 : index
    %11 = vector.load %arg1[%c0_13, %c0_14, %c1_15, %c0_16] : memref<1x4x30x8xbf16, #tpu.memory_space<vmem>>, vector<1x1x20x8xbf16>
    %12 = vector.shape_cast %11 : vector<1x1x20x8xbf16> to vector<20x8xbf16>
    %c2 = arith.constant 2 : index
    %c0_17 = arith.constant 0 : index
    %c0_18 = arith.constant 0 : index
    %13 = vector.load %arg2[%c2, %c0_17, %c0_18] : memref<9x8x8xbf16, #tpu.memory_space<vmem>>, vector<1x8x8xbf16>
    %14 = vector.shape_cast %13 : vector<1x8x8xbf16> to vector<8x8xbf16>
    %cst_19 = arith.constant dense<0.000000e+00> : vector<20x8xf32>
    %15 = tpu.matmul %12, %14, %cst_19 {dimension_numbers = #tpu.dot_dimension_numbers<[1], [0], [0], [1], [0, 0, 1, 1], [], []>} : vector<20x8xbf16>, vector<8x8xbf16>, vector<20x8xf32> -> vector<20x8xf32>
    %16 = arith.addf %10, %15 : vector<20x8xf32>
    %c0_20 = arith.constant 0 : index
    %c2_21 = arith.constant 2 : index
    %c0_22 = arith.constant 0 : index
    %c0_23 = arith.constant 0 : index
    %17 = vector.load %arg1[%c0_20, %c2_21, %c0_22, %c0_23] : memref<1x4x30x8xbf16, #tpu.memory_space<vmem>>, vector<1x1x20x8xbf16>
    %18 = vector.shape_cast %17 : vector<1x1x20x8xbf16> to vector<20x8xbf16>
    %c3 = arith.constant 3 : index
    %c0_24 = arith.constant 0 : index
    %c0_25 = arith.constant 0 : index
    %19 = vector.load %arg2[%c3, %c0_24, %c0_25] : memref<9x8x8xbf16, #tpu.memory_space<vmem>>, vector<1x8x8xbf16>
    %20 = vector.shape_cast %19 : vector<1x8x8xbf16> to vector<8x8xbf16>
    %cst_26 = arith.constant dense<0.000000e+00> : vector<20x8xf32>
    %21 = tpu.matmul %18, %20, %cst_26 {dimension_numbers = #tpu.dot_dimension_numbers<[1], [0], [0], [1], [0, 0, 1, 1], [], []>} : vector<20x8xbf16>, vector<8x8xbf16>, vector<20x8xf32> -> vector<20x8xf32>
    %22 = arith.addf %16, %21 : vector<20x8xf32>
    %c0_27 = arith.constant 0 : index
    %c3_28 = arith.constant 3 : index
    %c0_29 = arith.constant 0 : index
    %c0_30 = arith.constant 0 : index
    %23 = vector.load %arg1[%c0_27, %c3_28, %c0_29, %c0_30] : memref<1x4x30x8xbf16, #tpu.memory_space<vmem>>, vector<1x1x20x8xbf16>
    %24 = vector.shape_cast %23 : vector<1x1x20x8xbf16> to vector<20x8xbf16>
    %c4 = arith.constant 4 : index
    %c0_31 = arith.constant 0 : index
    %c0_32 = arith.constant 0 : index
    %25 = vector.load %arg2[%c4, %c0_31, %c0_32] : memref<9x8x8xbf16, #tpu.memory_space<vmem>>, vector<1x8x8xbf16>
    %26 = vector.shape_cast %25 : vector<1x8x8xbf16> to vector<8x8xbf16>
    %cst_33 = arith.constant dense<0.000000e+00> : vector<20x8xf32>
    %27 = tpu.matmul %24, %26, %cst_33 {dimension_numbers = #tpu.dot_dimension_numbers<[1], [0], [0], [1], [0, 0, 1, 1], [], []>} : vector<20x8xbf16>, vector<8x8xbf16>, vector<20x8xf32> -> vector<20x8xf32>
    %28 = arith.addf %22, %27 : vector<20x8xf32>
    %c0_34 = arith.constant 0 : index
    %c2_35 = arith.constant 2 : index
    %c1_36 = arith.constant 1 : index
    %c0_37 = arith.constant 0 : index
    %29 = vector.load %arg1[%c0_34, %c2_35, %c1_36, %c0_37] : memref<1x4x30x8xbf16, #tpu.memory_space<vmem>>, vector<1x1x20x8xbf16>
    %30 = vector.shape_cast %29 : vector<1x1x20x8xbf16> to vector<20x8xbf16>
    %c5 = arith.constant 5 : index
    %c0_38 = arith.constant 0 : index
    %c0_39 = arith.constant 0 : index
    %31 = vector.load %arg2[%c5, %c0_38, %c0_39] : memref<9x8x8xbf16, #tpu.memory_space<vmem>>, vector<1x8x8xbf16>
    %32 = vector.shape_cast %31 : vector<1x8x8xbf16> to vector<8x8xbf16>
    %cst_40 = arith.constant dense<0.000000e+00> : vector<20x8xf32>
    %33 = tpu.matmul %30, %32, %cst_40 {dimension_numbers = #tpu.dot_dimension_numbers<[1], [0], [0], [1], [0, 0, 1, 1], [], []>} : vector<20x8xbf16>, vector<8x8xbf16>, vector<20x8xf32> -> vector<20x8xf32>
    %34 = arith.addf %28, %33 : vector<20x8xf32>
    %c0_41 = arith.constant 0 : index
    %c0_42 = arith.constant 0 : index
    %c5_43 = arith.constant 5 : index
    %c0_44 = arith.constant 0 : index
    %35 = vector.load %arg1[%c0_41, %c0_42, %c5_43, %c0_44] : memref<1x4x30x8xbf16, #tpu.memory_space<vmem>>, vector<1x1x20x8xbf16>
    %36 = vector.shape_cast %35 : vector<1x1x20x8xbf16> to vector<20x8xbf16>
    %c6 = arith.constant 6 : index
    %c0_45 = arith.constant 0 : index
    %c0_46 = arith.constant 0 : index
    %37 = vector.load %arg2[%c6, %c0_45, %c0_46] : memref<9x8x8xbf16, #tpu.memory_space<vmem>>, vector<1x8x8xbf16>
    %38 = vector.shape_cast %37 : vector<1x8x8xbf16> to vector<8x8xbf16>
    %cst_47 = arith.constant dense<0.000000e+00> : vector<20x8xf32>
    %39 = tpu.matmul %36, %38, %cst_47 {dimension_numbers = #tpu.dot_dimension_numbers<[1], [0], [0], [1], [0, 0, 1, 1], [], []>} : vector<20x8xbf16>, vector<8x8xbf16>, vector<20x8xf32> -> vector<20x8xf32>
    %40 = arith.addf %34, %39 : vector<20x8xf32>
    %c0_48 = arith.constant 0 : index
    %c1_49 = arith.constant 1 : index
    %c5_50 = arith.constant 5 : index
    %c0_51 = arith.constant 0 : index
    %41 = vector.load %arg1[%c0_48, %c1_49, %c5_50, %c0_51] : memref<1x4x30x8xbf16, #tpu.memory_space<vmem>>, vector<1x1x20x8xbf16>
    %42 = vector.shape_cast %41 : vector<1x1x20x8xbf16> to vector<20x8xbf16>
    %c7 = arith.constant 7 : index
    %c0_52 = arith.constant 0 : index
    %c0_53 = arith.constant 0 : index
    %43 = vector.load %arg2[%c7, %c0_52, %c0_53] : memref<9x8x8xbf16, #tpu.memory_space<vmem>>, vector<1x8x8xbf16>
    %44 = vector.shape_cast %43 : vector<1x8x8xbf16> to vector<8x8xbf16>
    %cst_54 = arith.constant dense<0.000000e+00> : vector<20x8xf32>
    %45 = tpu.matmul %42, %44, %cst_54 {dimension_numbers = #tpu.dot_dimension_numbers<[1], [0], [0], [1], [0, 0, 1, 1], [], []>} : vector<20x8xbf16>, vector<8x8xbf16>, vector<20x8xf32> -> vector<20x8xf32>
    %46 = arith.addf %40, %45 : vector<20x8xf32>
    %c0_55 = arith.constant 0 : index
    %c0_56 = arith.constant 0 : index
    %c6_57 = arith.constant 6 : index
    %c0_58 = arith.constant 0 : index
    %47 = vector.load %arg1[%c0_55, %c0_56, %c6_57, %c0_58] : memref<1x4x30x8xbf16, #tpu.memory_space<vmem>>, vector<1x1x20x8xbf16>
    %48 = vector.shape_cast %47 : vector<1x1x20x8xbf16> to vector<20x8xbf16>
    %c8 = arith.constant 8 : index
    %c0_59 = arith.constant 0 : index
    %c0_60 = arith.constant 0 : index
    %49 = vector.load %arg2[%c8, %c0_59, %c0_60] : memref<9x8x8xbf16, #tpu.memory_space<vmem>>, vector<1x8x8xbf16>
    %50 = vector.shape_cast %49 : vector<1x8x8xbf16> to vector<8x8xbf16>
    %cst_61 = arith.constant dense<0.000000e+00> : vector<20x8xf32>
    %51 = tpu.matmul %48, %50, %cst_61 {dimension_numbers = #tpu.dot_dimension_numbers<[1], [0], [0], [1], [0, 0, 1, 1], [], []>} : vector<20x8xbf16>, vector<8x8xbf16>, vector<20x8xf32> -> vector<20x8xf32>
    %52 = arith.addf %46, %51 : vector<20x8xf32>
    %c0_62 = arith.constant 0 : index
    %c0_63 = arith.constant 0 : index
    %53 = vector.load %arg3[%c0_62, %c0_63] : memref<1x8xf32, #tpu.memory_space<vmem>>, vector<1x8xf32>
    %54 = vector.broadcast %53 : vector<1x8xf32> to vector<20x8xf32>
    %55 = arith.addf %52, %54 : vector<20x8xf32>
    %cst_64 = arith.constant 0.000000e+00 : f32
    %56 = vector.broadcast %cst_64 : f32 to vector<20x8xf32>
    %57 = arith.maximumf %55, %56 : vector<20x8xf32>
    %58 = arith.truncf %57 : vector<20x8xf32> to vector<20x8xbf16>
    %c0_65 = arith.constant 0 : index
    %c0_66 = arith.constant 0 : index
    %c0_67 = arith.constant 0 : index
    %59 = vector.load %arg4[%c0_65, %c0_66, %c0_67] : memref<1x20x8xbf16, #tpu.memory_space<vmem>>, vector<1x20x8xbf16>
    %60 = vector.shape_cast %59 : vector<1x20x8xbf16> to vector<20x8xbf16>
    %61 = vector.shape_cast %58 : vector<20x8xbf16> to vector<1x20x8xbf16>
    tpu.vector_store %arg4[%c0_65, %c0_66, %c0_67], %61 {strides = array<i32>} : memref<1x20x8xbf16, #tpu.memory_space<vmem>>, vector<1x20x8xbf16>,
    return
  }
  func.func @transform_0(%arg0: i32) -> (i32, i32, i32, i32) {
    %c0_i32 = arith.constant 0 : i32
    %c0_i32_0 = arith.constant 0 : i32
    %c0_i32_1 = arith.constant 0 : i32
    %c0_i32_2 = arith.constant 0 : i32
    return %arg0, %c0_i32, %c0_i32_0, %c0_i32_1 : i32, i32, i32, i32
  }
  func.func @transform_1(%arg0: i32) -> (i32, i32, i32) {
    %c0_i32 = arith.constant 0 : i32
    %c0_i32_0 = arith.constant 0 : i32
    %c0_i32_1 = arith.constant 0 : i32
    %c0_i32_2 = arith.constant 0 : i32
    return %c0_i32, %c0_i32_0, %c0_i32_1 : i32, i32, i32
  }
  func.func @transform_2(%arg0: i32) -> (i32, i32) {
    %c0_i32 = arith.constant 0 : i32
    %c0_i32_0 = arith.constant 0 : i32
    %c0_i32_1 = arith.constant 0 : i32
    return %c0_i32, %c0_i32_0 : i32, i32
  }
  func.func @transform_3(%arg0: i32) -> (i32, i32, i32) {
    %c0_i32 = arith.constant 0 : i32
    %c0_i32_0 = arith.constant 0 : i32
    %c0_i32_1 = arith.constant 0 : i32
    return %arg0, %c0_i32, %c0_i32_0 : i32, i32, i32
  }
}

module attributes {stable_mosaic.version = 11 : i64} {
  func.func @pool_fc_kernel(%arg0: i32, %arg1: memref<1x4x12x8xbf16, #tpu.memory_space<vmem>>, %arg2: memref<8x32xbf16, #tpu.memory_space<vmem>>, %arg3: memref<1x32xf32, #tpu.memory_space<vmem>>, %arg4: memref<1x6x32xf32, #tpu.memory_space<vmem>>) attributes {dimension_semantics = [#tpu.dimension_semantics<parallel>], iteration_bounds = array<i64: 2>, scalar_prefetch = 0 : i64, scratch_operands = 0 : i64, tpu.core_type = #tpu.core_type<tc>, window_params = [{transform_indices = @transform_0, window_bounds = array<i64: 1, 4, 12, 8>}, {pipeline_mode = #tpu.pipeline_mode<synchronous>, transform_indices = @transform_1, window_bounds = array<i64: 8, 32>}, {pipeline_mode = #tpu.pipeline_mode<synchronous>, transform_indices = @transform_2, window_bounds = array<i64: 1, 32>}, {transform_indices = @transform_3, window_bounds = array<i64: 1, 6, 32>}]} {
    %c0 = arith.constant 0 : index
    %c0_0 = arith.constant 0 : index
    %c0_1 = arith.constant 0 : index
    %c0_2 = arith.constant 0 : index
    %0 = vector.load %arg1[%c0, %c0_0, %c0_1, %c0_2] : memref<1x4x12x8xbf16, #tpu.memory_space<vmem>>, vector<1x1x6x8xbf16>
    %1 = vector.shape_cast %0 : vector<1x1x6x8xbf16> to vector<6x8xbf16>
    %c0_3 = arith.constant 0 : index
    %c1 = arith.constant 1 : index
    %c0_4 = arith.constant 0 : index
    %c0_5 = arith.constant 0 : index
    %2 = vector.load %arg1[%c0_3, %c1, %c0_4, %c0_5] : memref<1x4x12x8xbf16, #tpu.memory_space<vmem>>, vector<1x1x6x8xbf16>
    %3 = vector.shape_cast %2 : vector<1x1x6x8xbf16> to vector<6x8xbf16>
    %4 = arith.maximumf %1, %3 : vector<6x8xbf16>
    %c0_6 = arith.constant 0 : index
    %c0_7 = arith.constant 0 : index
    %c1_8 = arith.constant 1 : index
    %c0_9 = arith.constant 0 : index
    %5 = vector.load %arg1[%c0_6, %c0_7, %c1_8, %c0_9] : memref<1x4x12x8xbf16, #tpu.memory_space<vmem>>, vector<1x1x6x8xbf16>
    %6 = vector.shape_cast %5 : vector<1x1x6x8xbf16> to vector<6x8xbf16>
    %7 = arith.maximumf %4, %6 : vector<6x8xbf16>
    %c0_10 = arith.constant 0 : index
    %c2 = arith.constant 2 : index
    %c0_11 = arith.constant 0 : index
    %c0_12 = arith.constant 0 : index
    %8 = vector.load %arg1[%c0_10, %c2, %c0_11, %c0_12] : memref<1x4x12x8xbf16, #tpu.memory_space<vmem>>, vector<1x1x6x8xbf16>
    %9 = vector.shape_cast %8 : vector<1x1x6x8xbf16> to vector<6x8xbf16>
    %10 = arith.maximumf %7, %9 : vector<6x8xbf16>
    %c0_13 = arith.constant 0 : index
    %c3 = arith.constant 3 : index
    %c0_14 = arith.constant 0 : index
    %c0_15 = arith.constant 0 : index
    %11 = vector.load %arg1[%c0_13, %c3, %c0_14, %c0_15] : memref<1x4x12x8xbf16, #tpu.memory_space<vmem>>, vector<1x1x6x8xbf16>
    %12 = vector.shape_cast %11 : vector<1x1x6x8xbf16> to vector<6x8xbf16>
    %13 = arith.maximumf %10, %12 : vector<6x8xbf16>
    %c0_16 = arith.constant 0 : index
    %c2_17 = arith.constant 2 : index
    %c1_18 = arith.constant 1 : index
    %c0_19 = arith.constant 0 : index
    %14 = vector.load %arg1[%c0_16, %c2_17, %c1_18, %c0_19] : memref<1x4x12x8xbf16, #tpu.memory_space<vmem>>, vector<1x1x6x8xbf16>
    %15 = vector.shape_cast %14 : vector<1x1x6x8xbf16> to vector<6x8xbf16>
    %16 = arith.maximumf %13, %15 : vector<6x8xbf16>
    %c0_20 = arith.constant 0 : index
    %c0_21 = arith.constant 0 : index
    %c3_22 = arith.constant 3 : index
    %c0_23 = arith.constant 0 : index
    %17 = vector.load %arg1[%c0_20, %c0_21, %c3_22, %c0_23] : memref<1x4x12x8xbf16, #tpu.memory_space<vmem>>, vector<1x1x6x8xbf16>
    %18 = vector.shape_cast %17 : vector<1x1x6x8xbf16> to vector<6x8xbf16>
    %19 = arith.maximumf %16, %18 : vector<6x8xbf16>
    %c0_24 = arith.constant 0 : index
    %c1_25 = arith.constant 1 : index
    %c3_26 = arith.constant 3 : index
    %c0_27 = arith.constant 0 : index
    %20 = vector.load %arg1[%c0_24, %c1_25, %c3_26, %c0_27] : memref<1x4x12x8xbf16, #tpu.memory_space<vmem>>, vector<1x1x6x8xbf16>
    %21 = vector.shape_cast %20 : vector<1x1x6x8xbf16> to vector<6x8xbf16>
    %22 = arith.maximumf %19, %21 : vector<6x8xbf16>
    %c0_28 = arith.constant 0 : index
    %c0_29 = arith.constant 0 : index
    %c4 = arith.constant 4 : index
    %c0_30 = arith.constant 0 : index
    %23 = vector.load %arg1[%c0_28, %c0_29, %c4, %c0_30] : memref<1x4x12x8xbf16, #tpu.memory_space<vmem>>, vector<1x1x6x8xbf16>
    %24 = vector.shape_cast %23 : vector<1x1x6x8xbf16> to vector<6x8xbf16>
    %25 = arith.maximumf %22, %24 : vector<6x8xbf16>
    %c0_31 = arith.constant 0 : index
    %c0_32 = arith.constant 0 : index
    %26 = vector.load %arg2[%c0_31, %c0_32] : memref<8x32xbf16, #tpu.memory_space<vmem>>, vector<8x32xbf16>
    %cst = arith.constant dense<0.000000e+00> : vector<6x32xf32>
    %27 = tpu.matmul %25, %26, %cst {dimension_numbers = #tpu.dot_dimension_numbers<[1], [0], [0], [1], [0, 0, 1, 1], [], []>} : vector<6x8xbf16>, vector<8x32xbf16>, vector<6x32xf32> -> vector<6x32xf32>
    %c0_33 = arith.constant 0 : index
    %c0_34 = arith.constant 0 : index
    %28 = vector.load %arg3[%c0_33, %c0_34] : memref<1x32xf32, #tpu.memory_space<vmem>>, vector<1x32xf32>
    %29 = vector.broadcast %28 : vector<1x32xf32> to vector<6x32xf32>
    %30 = arith.addf %27, %29 : vector<6x32xf32>
    %c0_35 = arith.constant 0 : index
    %c0_36 = arith.constant 0 : index
    %c0_37 = arith.constant 0 : index
    %31 = vector.load %arg4[%c0_35, %c0_36, %c0_37] : memref<1x6x32xf32, #tpu.memory_space<vmem>>, vector<1x6x32xf32>
    %32 = vector.shape_cast %31 : vector<1x6x32xf32> to vector<6x32xf32>
    %33 = vector.shape_cast %30 : vector<6x32xf32> to vector<1x6x32xf32>
    tpu.vector_store %arg4[%c0_35, %c0_36, %c0_37], %33 {strides = array<i32>} : memref<1x6x32xf32, #tpu.memory_space<vmem>>, vector<1x6x32xf32>,
    return
  }
  func.func @transform_0(%arg0: i32) -> (i32, i32, i32, i32) {
    %c0_i32 = arith.constant 0 : i32
    %c0_i32_0 = arith.constant 0 : i32
    %c0_i32_1 = arith.constant 0 : i32
    %c0_i32_2 = arith.constant 0 : i32
    return %arg0, %c0_i32, %c0_i32_0, %c0_i32_1 : i32, i32, i32, i32
  }
  func.func @transform_1(%arg0: i32) -> (i32, i32) {
    %c0_i32 = arith.constant 0 : i32
    %c0_i32_0 = arith.constant 0 : i32
    %c0_i32_1 = arith.constant 0 : i32
    return %c0_i32, %c0_i32_0 : i32, i32
  }
  func.func @transform_2(%arg0: i32) -> (i32, i32) {
    %c0_i32 = arith.constant 0 : i32
    %c0_i32_0 = arith.constant 0 : i32
    %c0_i32_1 = arith.constant 0 : i32
    return %c0_i32, %c0_i32_0 : i32, i32
  }
  func.func @transform_3(%arg0: i32) -> (i32, i32, i32) {
    %c0_i32 = arith.constant 0 : i32
    %c0_i32_0 = arith.constant 0 : i32
    %c0_i32_1 = arith.constant 0 : i32
    return %arg0, %c0_i32, %c0_i32_0 : i32, i32, i32
  }
}

</mosaic_0001>

<bundles_post_ra>
// kernel: conv_stem_forward.4
= control target key start
LH: loop header
LB: loop body
LE: loop exit
PB: predicated region body
PF: predicated region fallthrough
CT: control target
= control target key end

     0   :  { %s767_s12 = smov 0   ;;  %s937_s0 = inlined_call_operand.vmem [shape: bf16[2,256,36], index: 0, kind: input, shape index: {}]   ;;  %s938_s1 = inlined_call_operand.vmem [shape: bf16[36,8], index: 1, kind: input, shape index: {}]   ;;  %s939_s2 = inlined_call_operand.vmem [shape: f32[1,8], index: 2, kind: input, shape index: {}]   ;;  %s940_s3 = inlined_call_operand.vmem [shape: bf16[2,256,8], index: 3, kind: output, shape index: {}]  }
   0x1 LB: > { %s602_s13 = sadd.s32 4294967295, %s745_s12   ;;  %p606_p0 = scmp.ge.s32.totalorder %s745_s12, 1  ;;  %s745_s12 = sphi %s767_s12, %s13_s12  }
   0x2   : > { %p137_p1 = scmp.lt.s32.totalorder %s745_s12, 3 }
   0x4   : > { %p138_p2 = pnand %p606_p0, %p137_p1 }
   0x5   : > { %p161_p3 = scmp.lt.s32.totalorder (!%p138_p2), %s602_s13, 1 }
   0x6   : > { %141 = sbr.rel (%p138_p2) target bundleno = 225 (0xe1), region = 32 }
   0xb   : > { %v208_v0 = vld [vmem:[%s938_s1 + $0x10] sm:$0x3]  ;;  %vm357_vm0 = vcmask 1041408   ;;  %s942_s13 = smov (!%p161_p3, %s602_s13), 1  ;;  %v720_v4 = vld [vmem:[%s938_s1 + $0x8] sm:$0xff]  ;;  %v719_v5 = vld [vmem:[%s938_s1] sm:$0xff] }
   0xc   : > { %v302_v1 = vunpack.c.l.b16 %v208_v0  ;;  %s701_s18 = sshll.u32 %s942_s13, 7  ;;  %vm308_vm1 = vcmask 293888   ;;  %v829_v22 = vld [vmem:[%s939_s2] ss:$0 sm:$0xff]  ;;  %vm514_vm2 = vcmask 60416  }
   0xd   : > { %s792_s23 = scalar_lea.vmem %s937_s0, %s701_s18  ;;  %s838_s28 = scalar_lea.vmem %s940_s3, %s701_s18 }
   0xe   : > { %v305_v2 = vpack.c.b16 %v302_v1, %v302_v1  ;;  %v703_v6 = vld [vmem:[%s792_s23] sm:$0xff]  ;;  %v704_v10 = vld [vmem:[%s792_s23 + $0x8] sm:$0xff]  ;;  %v705_v14 = vld [vmem:[%s792_s23 + $0x10] sm:$0xff] }
   0xf   : > { %v707_v7 = vld [vmem:[%s792_s23 + $0x20] sm:$0xff]  ;;  %v708_v11 = vld [vmem:[%s792_s23 + $0x28] sm:$0xff]  ;;  %v709_v15 = vld [vmem:[%s792_s23 + $0x30] sm:$0xff] }
  0x10   : > { %v359_v3 = vsel %vm357_vm0, %v305_v2, 0  ;;  %v711_v8 = vld [vmem:[%s792_s23 + $0x40] sm:$0xff]  ;;  %v712_v12 = vld [vmem:[%s792_s23 + $0x48] sm:$0xff]  ;;  %v713_v16 = vld [vmem:[%s792_s23 + $0x50] sm:$0xff] }
  0x11   : > { %366 = vmatpush.bf16.msra.mxu0 %v359_v3  ;;  %721 = vmatpush.bf16.msra.mxu1 %v359_v3  ;;  %v715_v9 = vld [vmem:[%s792_s23 + $0x60] sm:$0xff]  ;;  %v716_v13 = vld [vmem:[%s792_s23 + $0x68] sm:$0xff]  ;;  %v717_v17 = vld [vmem:[%s792_s23 + $0x70] sm:$0xff] }
  0x12   : > { %722 = vmatpush.bf16.msra.mxu2 %v359_v3  ;;  %723 = vmatpush.bf16.msra.mxu3 %v359_v3  ;;  %v706_v18 = vld [vmem:[%s792_s23 + $0x18] sm:$0xff] }
  0x13   : > { %v710_v19 = vld [vmem:[%s792_s23 + $0x38] sm:$0xff] }
  0x14   : > { %v714_v20 = vld [vmem:[%s792_s23 + $0x58] sm:$0xff] }
  0x15   : > { %367 = vmatpush.bf16.msra.mxu0 %v720_v4  ;;  %724 = vmatpush.bf16.msra.mxu1 %v720_v4  ;;  %v718_v21 = vld [vmem:[%s792_s23 + $0x78] sm:$0xff] }
  0x16   : > { %725 = vmatpush.bf16.msra.mxu2 %v720_v4  ;;  %726 = vmatpush.bf16.msra.mxu3 %v720_v4 }
  0x19   : > { %368 = vmatpush.bf16.msra.mxu0 %v719_v5  ;;  %727 = vmatpush.bf16.msra.mxu1 %v719_v5 }
  0x1a   : > { %728 = vmatpush.bf16.msra.mxu2 %v719_v5  ;;  %729 = vmatpush.bf16.msra.mxu3 %v719_v5 }
  0x1c   : > { %683 = vmatmul.msk.bf16.vlgmr.msra.gmra.mxu0 %vm308_vm1, %v703_v6  ;;  %687 = vmatmul.msk.bf16.vlgmr.msra.gmra.mxu1 %vm308_vm1, %v707_v7 }
  0x1d   : > { %691 = vmatmul.msk.bf16.vlgmr.msra.gmra.mxu2 %vm308_vm1, %v711_v8  ;;  %695 = vmatmul.msk.bf16.vlgmr.msra.gmra.mxu3 %vm308_vm1, %v715_v9 }
  0x2c   : > { %684 = vmatmul.msk.bf16.gmra.mxu0 %vm308_vm1, %v704_v10  ;;  %688 = vmatmul.msk.bf16.gmra.mxu1 %vm308_vm1, %v708_v11 }
  0x2d   : > { %692 = vmatmul.msk.bf16.gmra.mxu2 %vm308_vm1, %v712_v12  ;;  %696 = vmatmul.msk.bf16.gmra.mxu3 %vm308_vm1, %v716_v13 }
  0x3c   : > { %685 = vmatmul.msk.bf16.gmra.mxu0 %vm308_vm1, %v705_v14  ;;  %689 = vmatmul.msk.bf16.gmra.mxu1 %vm308_vm1, %v709_v15 }
  0x3d   : > { %693 = vmatmul.msk.bf16.gmra.mxu2 %vm308_vm1, %v713_v16  ;;  %697 = vmatmul.msk.bf16.gmra.mxu3 %vm308_vm1, %v717_v17 }
  0x4c   : > { %686 = vmatmul.msk.bf16.gmra.mxu0 %vm308_vm1, %v706_v18  ;;  %690 = vmatmul.msk.bf16.gmra.mxu1 %vm308_vm1, %v710_v19 }
  0x4d   : > { %694 = vmatmul.msk.bf16.gmra.mxu2 %vm308_vm1, %v714_v20  ;;  %698 = vmatmul.msk.bf16.gmra.mxu3 %vm308_vm1, %v718_v21 }
  0x99   : > { %v370_v23 = vpop.f32.mrf.mxu0  ;;  %v390_v24 = vpop.f32.mrf.mxu1 }
  0x9a   : > { %v371_v25 = vadd.f32 %v829_v22, %v370_v23  ;;  %v391_v26 = vadd.f32 %v829_v22, %v390_v24 }
  0x9c   : > { %v450_v27 = vmax.f32 %v371_v25, 0.0  ;;  %v458_v28 = vmax.f32 %v391_v26, 0.0 }
  0x9e   : > { %v482_v29 = vpack.c.bf16 %v450_v27, %v450_v27  ;;  %v490_v30 = vpack.c.bf16 %v458_v28, %v458_v28 }
  0xa0   : > { %515 = vst.msk [vmem:[%s838_s28] sm:$0xf] %vm514_vm2, %v482_v29  ;;  %v410_v31 = vpop.f32.mrf.mxu2  ;;  %v430_v32 = vpop.f32.mrf.mxu3 }
  0xa1   : > { %523 = vst.msk [vmem:[%s838_s28 + $0x20] sm:$0xf] %vm514_vm2, %v490_v30  ;;  %v411_v33 = vadd.f32 %v829_v22, %v410_v31  ;;  %v431_v34 = vadd.f32 %v829_v22, %v430_v32  ;;  %v372_v35 = vpop.f32.mrf.mxu0  ;;  %v392_v36 = vpop.f32.mrf.mxu1 }
  0xa2   : > { %v373_v37 = vadd.f32 %v829_v22, %v372_v35  ;;  %v393_v38 = vadd.f32 %v829_v22, %v392_v36 }
  0xa3   : > { %v466_v39 = vmax.f32 %v411_v33, 0.0  ;;  %v474_v40 = vmax.f32 %v431_v34, 0.0 }
  0xa4   : > { %v451_v41 = vmax.f32 %v373_v37, 0.0  ;;  %v459_v42 = vmax.f32 %v393_v38, 0.0 }
  0xa5   : > { %v498_v43 = vpack.c.bf16 %v466_v39, %v466_v39  ;;  %v506_v44 = vpack.c.bf16 %v474_v40, %v474_v40 }
  0xa6   : > { %v483_v45 = vpack.c.bf16 %v451_v41, %v451_v41  ;;  %v491_v46 = vpack.c.bf16 %v459_v42, %v459_v42 }
  0xa7   : > { %531 = vst.msk [vmem:[%s838_s28 + $0x40] sm:$0xf] %vm514_vm2, %v498_v43 }
  0xa8   : > { %539 = vst.msk [vmem:[%s838_s28 + $0x60] sm:$0xf] %vm514_vm2, %v506_v44  ;;  %v412_v47 = vpop.f32.mrf.mxu2  ;;  %v432_v48 = vpop.f32.mrf.mxu3 }
  0xa9   : > { %516 = vst.msk [vmem:[%s838_s28 + $0x4] sm:$0xf] %vm514_vm2, %v483_v45  ;;  %v413_v49 = vadd.f32 %v829_v22, %v412_v47  ;;  %v433_v50 = vadd.f32 %v829_v22, %v432_v48  ;;  %v375_v51 = vpop.f32.mrf.mxu0  ;;  %v395_v52 = vpop.f32.mrf.mxu1 }
  0xaa   : > { %524 = vst.msk [vmem:[%s838_s28 + $0x24] sm:$0xf] %vm514_vm2, %v491_v46  ;;  %v376_v53 = vadd.f32 %v829_v22, %v375_v51  ;;  %v396_v54 = vadd.f32 %v829_v22, %v395_v52 }
  0xab   : > { %v467_v55 = vmax.f32 %v413_v49, 0.0  ;;  %v475_v56 = vmax.f32 %v433_v50, 0.0 }
  0xac   : > { %v452_v57 = vmax.f32 %v376_v53, 0.0  ;;  %v460_v58 = vmax.f32 %v396_v54, 0.0 }
  0xad   : > { %v499_v59 = vpack.c.bf16 %v467_v55, %v467_v55  ;;  %v507_v60 = vpack.c.bf16 %v475_v56, %v475_v56 }
  0xae   : > { %v484_v61 = vpack.c.bf16 %v452_v57, %v452_v57  ;;  %v492_v62 = vpack.c.bf16 %v460_v58, %v460_v58 }
  0xaf   : > { %532 = vst.msk [vmem:[%s838_s28 + $0x44] sm:$0xf] %vm514_vm2, %v499_v59 }
  0xb0   : > { %540 = vst.msk [vmem:[%s838_s28 + $0x64] sm:$0xf] %vm514_vm2, %v507_v60  ;;  %v415_v63 = vpop.f32.mrf.mxu2  ;;  %v435_v0 = vpop.f32.mrf.mxu3 }
  0xb1   : > { %517 = vst.msk [vmem:[%s838_s28 + $0x8] sm:$0xf] %vm514_vm2, %v484_v61  ;;  %v416_v1 = vadd.f32 %v829_v22, %v415_v63  ;;  %v436_v2 = vadd.f32 %v829_v22, %v435_v0  ;;  %v377_v3 = vpop.f32.mrf.mxu0  ;;  %v397_v4 = vpop.f32.mrf.mxu1 }
  0xb2   : > { %525 = vst.msk [vmem:[%s838_s28 + $0x28] sm:$0xf] %vm514_vm2, %v492_v62  ;;  %v378_v5 = vadd.f32 %v829_v22, %v377_v3  ;;  %v398_v6 = vadd.f32 %v829_v22, %v397_v4 }
  0xb3   : > { %v468_v7 = vmax.f32 %v416_v1, 0.0  ;;  %v476_v8 = vmax.f32 %v436_v2, 0.0 }
  0xb4   : > { %v453_v9 = vmax.f32 %v378_v5, 0.0  ;;  %v461_v10 = vmax.f32 %v398_v6, 0.0 }
  0xb5   : > { %v500_v11 = vpack.c.bf16 %v468_v7, %v468_v7  ;;  %v508_v12 = vpack.c.bf16 %v476_v8, %v476_v8 }
  0xb6   : > { %v485_v13 = vpack.c.bf16 %v453_v9, %v453_v9  ;;  %v493_v14 = vpack.c.bf16 %v461_v10, %v461_v10 }
  0xb7   : > { %533 = vst.msk [vmem:[%s838_s28 + $0x48] sm:$0xf] %vm514_vm2, %v500_v11 }
  0xb8   : > { %541 = vst.msk [vmem:[%s838_s28 + $0x68] sm:$0xf] %vm514_vm2, %v508_v12  ;;  %v417_v15 = vpop.f32.mrf.mxu2  ;;  %v437_v16 = vpop.f32.mrf.mxu3 }
  0xb9   : > { %518 = vst.msk [vmem:[%s838_s28 + $0xc] sm:$0xf] %vm514_vm2, %v485_v13  ;;  %v418_v17 = vadd.f32 %v829_v22, %v417_v15  ;;  %v438_v18 = vadd.f32 %v829_v22, %v437_v16  ;;  %v380_v19 = vpop.f32.mrf.mxu0  ;;  %v400_v20 = vpop.f32.mrf.mxu1 }
  0xba   : > { %526 = vst.msk [vmem:[%s838_s28 + $0x2c] sm:$0xf] %vm514_vm2, %v493_v14  ;;  %v381_v21 = vadd.f32 %v829_v22, %v380_v19  ;;  %v401_v23 = vadd.f32 %v829_v22, %v400_v20 }
  0xbb   : > { %v469_v24 = vmax.f32 %v418_v17, 0.0  ;;  %v477_v25 = vmax.f32 %v438_v18, 0.0 }
  0xbc   : > { %v454_v26 = vmax.f32 %v381_v21, 0.0  ;;  %v462_v27 = vmax.f32 %v401_v23, 0.0 }
  0xbd   : > { %v501_v28 = vpack.c.bf16 %v469_v24, %v469_v24  ;;  %v509_v29 = vpack.c.bf16 %v477_v25, %v477_v25 }
  0xbe   : > { %v486_v30 = vpack.c.bf16 %v454_v26, %v454_v26  ;;  %v494_v31 = vpack.c.bf16 %v462_v27, %v462_v27 }
  0xbf   : > { %534 = vst.msk [vmem:[%s838_s28 + $0x4c] sm:$0xf] %vm514_vm2, %v501_v28 }
  0xc0   : > { %542 = vst.msk [vmem:[%s838_s28 + $0x6c] sm:$0xf] %vm514_vm2, %v509_v29  ;;  %v420_v32 = vpop.f32.mrf.mxu2  ;;  %v440_v33 = vpop.f32.mrf.mxu3 }
  0xc1   : > { %519 = vst.msk [vmem:[%s838_s28 + $0x10] sm:$0xf] %vm514_vm2, %v486_v30  ;;  %v421_v34 = vadd.f32 %v829_v22, %v420_v32  ;;  %v441_v35 = vadd.f32 %v829_v22, %v440_v33  ;;  %v382_v36 = vpop.f32.mrf.mxu0  ;;  %v402_v37 = vpop.f32.mrf.mxu1 }
  0xc2   : > { %527 = vst.msk [vmem:[%s838_s28 + $0x30] sm:$0xf] %vm514_vm2, %v494_v31  ;;  %v383_v38 = vadd.f32 %v829_v22, %v382_v36  ;;  %v403_v39 = vadd.f32 %v829_v22, %v402_v37 }
  0xc3   : > { %v470_v40 = vmax.f32 %v421_v34, 0.0  ;;  %v478_v41 = vmax.f32 %v441_v35, 0.0 }
  0xc4   : > { %v455_v42 = vmax.f32 %v383_v38, 0.0  ;;  %v463_v43 = vmax.f32 %v403_v39, 0.0 }
  0xc5   : > { %v502_v44 = vpack.c.bf16 %v470_v40, %v470_v40  ;;  %v510_v45 = vpack.c.bf16 %v478_v41, %v478_v41 }
  0xc6   : > { %v487_v46 = vpack.c.bf16 %v455_v42, %v455_v42  ;;  %v495_v47 = vpack.c.bf16 %v463_v43, %v463_v43 }
  0xc7   : > { %535 = vst.msk [vmem:[%s838_s28 + $0x50] sm:$0xf] %vm514_vm2, %v502_v44 }
  0xc8   : > { %543 = vst.msk [vmem:[%s838_s28 + $0x70] sm:$0xf] %vm514_vm2, %v510_v45  ;;  %v422_v48 = vpop.f32.mrf.mxu2  ;;  %v442_v49 = vpop.f32.mrf.mxu3 }
  0xc9   : > { %520 = vst.msk [vmem:[%s838_s28 + $0x14] sm:$0xf] %vm514_vm2, %v487_v46  ;;  %v423_v50 = vadd.f32 %v829_v22, %v422_v48  ;;  %v443_v51 = vadd.f32 %v829_v22, %v442_v49  ;;  %v385_v52 = vpop.f32.mrf.mxu0  ;;  %v405_v53 = vpop.f32.mrf.mxu1 }
  0xca   : > { %528 = vst.msk [vmem:[%s838_s28 + $0x34] sm:$0xf] %vm514_vm2, %v495_v47  ;;  %v386_v54 = vadd.f32 %v829_v22, %v385_v52  ;;  %v406_v55 = vadd.f32 %v829_v22, %v405_v53 }
  0xcb   : > { %v471_v56 = vmax.f32 %v423_v50, 0.0  ;;  %v479_v57 = vmax.f32 %v443_v51, 0.0 }
  0xcc   : > { %v456_v58 = vmax.f32 %v386_v54, 0.0  ;;  %v464_v59 = vmax.f32 %v406_v55, 0.0 }
  0xcd   : > { %v503_v60 = vpack.c.bf16 %v471_v56, %v471_v56  ;;  %v511_v61 = vpack.c.bf16 %v479_v57, %v479_v57 }
  0xce   : > { %v488_v62 = vpack.c.bf16 %v456_v58, %v456_v58  ;;  %v496_v63 = vpack.c.bf16 %v464_v59, %v464_v59 }
  0xcf   : > { %536 = vst.msk [vmem:[%s838_s28 + $0x54] sm:$0xf] %vm514_vm2, %v503_v60 }
  0xd0   : > { %544 = vst.msk [vmem:[%s838_s28 + $0x74] sm:$0xf] %vm514_vm2, %v511_v61  ;;  %v425_v0 = vpop.f32.mrf.mxu2  ;;  %v445_v1 = vpop.f32.mrf.mxu3 }
  0xd1   : > { %521 = vst.msk [vmem:[%s838_s28 + $0x18] sm:$0xf] %vm514_vm2, %v488_v62  ;;  %v426_v2 = vadd.f32 %v829_v22, %v425_v0  ;;  %v446_v3 = vadd.f32 %v829_v22, %v445_v1  ;;  %v387_v4 = vpop.f32.mrf.mxu0  ;;  %v407_v5 = vpop.f32.mrf.mxu1 }
  0xd2   : > { %529 = vst.msk [vmem:[%s838_s28 + $0x38] sm:$0xf] %vm514_vm2, %v496_v63  ;;  %v388_v6 = vadd.f32 %v829_v22, %v387_v4  ;;  %v408_v7 = vadd.f32 %v829_v22, %v407_v5 }
  0xd3   : > { %v472_v8 = vmax.f32 %v426_v2, 0.0  ;;  %v480_v9 = vmax.f32 %v446_v3, 0.0 }
  0xd4   : > { %v457_v10 = vmax.f32 %v388_v6, 0.0  ;;  %v465_v11 = vmax.f32 %v408_v7, 0.0 }
  0xd5   : > { %v504_v12 = vpack.c.bf16 %v472_v8, %v472_v8  ;;  %v512_v13 = vpack.c.bf16 %v480_v9, %v480_v9 }
  0xd6   : > { %v489_v14 = vpack.c.bf16 %v457_v10, %v457_v10  ;;  %v497_v15 = vpack.c.bf16 %v465_v11, %v465_v11 }
  0xd7   : > { %537 = vst.msk [vmem:[%s838_s28 + $0x58] sm:$0xf] %vm514_vm2, %v504_v12 }
  0xd8   : > { %545 = vst.msk [vmem:[%s838_s28 + $0x78] sm:$0xf] %vm514_vm2, %v512_v13  ;;  %v427_v16 = vpop.f32.mrf.mxu2  ;;  %v447_v17 = vpop.f32.mrf.mxu3 }
  0xd9   : > { %522 = vst.msk [vmem:[%s838_s28 + $0x1c] sm:$0xf] %vm514_vm2, %v489_v14  ;;  %v428_v18 = vadd.f32 %v829_v22, %v427_v16  ;;  %v448_v19 = vadd.f32 %v829_v22, %v447_v17 }
  0xda   : > { %530 = vst.msk [vmem:[%s838_s28 + $0x3c] sm:$0xf] %vm514_vm2, %v497_v15 }
  0xdb   : > { %v473_v20 = vmax.f32 %v428_v18, 0.0  ;;  %v481_v21 = vmax.f32 %v448_v19, 0.0 }
  0xdd   : > { %v505_v23 = vpack.c.bf16 %v473_v20, %v473_v20  ;;  %v513_v24 = vpack.c.bf16 %v481_v21, %v481_v21 }
  0xdf   : > { %538 = vst.msk [vmem:[%s838_s28 + $0x5c] sm:$0xf] %vm514_vm2, %v505_v23 }
  0xe0   : > { %546 = vst.msk [vmem:[%s838_s28 + $0x7c] sm:$0xf] %vm514_vm2, %v513_v24 }
  0xe1 PF: > { %s13_s12 = sadd.s32 1, %s745_s12  }
  0xe2   : > { %p10_p4 = scmp.ge.s32.totalorder %s13_s12, 4  }
  0xe4   :  { %12 = sbr.rel (!%p10_p4) target bundleno = 1 (0x1), region = 62 }

// kernel: conv_stem_forward.7
= control target key start
LH: loop header
LB: loop body
LE: loop exit
PB: predicated region body
PF: predicated region fallthrough
CT: control target
= control target key end

     0   :  { %s378_s12 = smov 0   ;;  %s407_s0 = inlined_call_operand.vmem [shape: bf16[2,4,12,8], index: 0, kind: input, shape index: {}]   ;;  %s408_s1 = inlined_call_operand.vmem [shape: bf16[8,32], index: 1, kind: input, shape index: {}]   ;;  %s409_s2 = inlined_call_operand.vmem [shape: f32[1,32], index: 2, kind: input, shape index: {}]   ;;  %s410_s3 = inlined_call_operand.vmem [shape: f32[2,6,32], index: 3, kind: output, shape index: {}]  }
   0x1 LB: > { %s323_s13 = sadd.s32 4294967295, %s356_s12   ;;  %p327_p0 = scmp.ge.s32.totalorder %s356_s12, 1  ;;  %s356_s12 = sphi %s378_s12, %s13_s12  }
   0x2   : > { %p137_p1 = scmp.lt.s32.totalorder %s356_s12, 3 }
   0x4   : > { %p138_p2 = pnand %p327_p0, %p137_p1 }
   0x5   : > { %p160_p3 = scmp.lt.s32.totalorder (!%p138_p2), %s323_s13, 1 }
   0x6   : > { %141 = sbr.rel (%p138_p2) target bundleno = 170 (0xaa), region = 32 }
   0xb   : > { %vm236_vm0 = vcmask 1043456   ;;  %v243_v0 = vld [vmem:[%s408_s1] sm:$0xf]  ;;  %s412_s13 = smov (!%p160_p3, %s323_s13), 1  ;;  %vm212_vm1 = vcmask 1044480   ;;  %vm248_vm2 = vcmask 64512  }
   0xc   : > { %v253_v1 = vsel %vm236_vm0, %v243_v0, 0  ;;  %s340_s16 = sshll.u32 %s412_s13, 5  ;;  %s330_s20 = sshll.u32 %s412_s13, 3  ;;  %v349_v44 = vld [vmem:[%s409_s2] ss:$0 sm:$0xff]  ;;  %vm268_vm3 = vcmask 259072  }
   0xd   : > { %262 = vmatpush.bf16.msra.mxu0 %v253_v1  ;;  %s164_s19 = scalar_lea.vmem %s407_s0, %s340_s16  ;;  %s168_s25 = scalar_lea.vmem %s410_s3, %s330_s20 }
   0xe   : > { %v170_v2 = vld [vmem:[%s164_s19] sm:$0x7]  ;;  %v331_v3 = vld [vmem:[%s164_s19 + $0x8] sm:$0x7]  ;;  %v332_v8 = vld [vmem:[%s164_s19 + $0x10] sm:$0x7] }
   0xf   : > { %v177_v4 = vld [vmem:[%s164_s19] sm:$0xf]  ;;  %v173_v5 = vunpack.c.l.bf16 %v170_v2  ;;  %v174_v6 = vunpack.c.l.bf16 %v331_v3  ;;  %v333_v9 = vld [vmem:[%s164_s19 + $0x18] sm:$0x7]  ;;  %v334_v10 = vld [vmem:[%s164_s19 + $0x10] sm:$0xf]  ;;  %v188_v11 = vunpack.c.l.bf16 %v332_v8 }
  0x10   : > { %v179_v7 = vunpack.c.l.bf16 %v177_v4  ;;  %v199_v12 = vunpack.c.l.bf16 %v334_v10  ;;  %v205_v13 = vld [vmem:[%s164_s19] sm:$0xe]  ;;  %v206_v14 = vld [vmem:[%s164_s19 + $0x4] sm:$0x1]  ;;  %v335_v15 = vld [vmem:[%s164_s19 + $0x8] sm:$0xe]  ;;  %v194_v25 = vunpack.c.l.bf16 %v333_v9 }
  0x11   : > { %v175_v16 = vmax.f32 %v173_v5, %v174_v6  ;;  %v208_v18 = vunpack.c.l.bf16 %v205_v13  ;;  %v209_v19 = vunpack.c.l.bf16 %v206_v14  ;;  %v336_v20 = vld [vmem:[%s164_s19 + $0xc] sm:$0x1]  ;;  %v232_v21 = vld [vmem:[%s164_s19] sm:$0xc]  ;;  %v222_v22 = vunpack.c.l.bf16 %v335_v15 }
  0x12   : > { %v181_v17 = vrot.slane %v179_v7, 1  ;;  %v223_v23 = vunpack.c.l.bf16 %v336_v20  ;;  %v234_v28 = vunpack.c.l.bf16 %v232_v21  ;;  %v201_v30 = vrot.slane %v199_v12, 1 }
  0x13   : > { %v213_v26 = vrot.slane %v208_v18, 3  ;;  %v214_v27 = vrot.slane %v209_v19, 3  ;;  %v226_v31 = vrot.slane %v222_v22, 3  ;;  %v238_v36 = vrot.slane %v209_v19, 4 }
  0x14   : > { %v183_v24 = vmax.f32 %v175_v16, %v181_v17  ;;  %v227_v32 = vrot.slane %v223_v23, 3  ;;  %v237_v35 = vrot.slane %v234_v28, 4 }
  0x15   : > { %v215_v34 = vsel %vm212_vm1, %v213_v26, %v214_v27 }
  0x16   : > { %v189_v29 = vmax.f32 %v183_v24, %v188_v11  ;;  %v228_v38 = vsel %vm212_vm1, %v226_v31, %v227_v32  ;;  %v239_v40 = vsel %vm236_vm0, %v237_v35, %v238_v36 }
  0x18   : > { %v195_v33 = vmax.f32 %v189_v29, %v194_v25 }
  0x1a   : > { %v203_v37 = vmax.f32 %v195_v33, %v201_v30 }
  0x1c   : > { %v217_v39 = vmax.f32 %v203_v37, %v215_v34 }
  0x1e   : > { %v230_v41 = vmax.f32 %v217_v39, %v228_v38 }
  0x20   : > { %v241_v42 = vmax.f32 %v230_v41, %v239_v40 }
  0x22   : > { %v242_v43 = vpack.c.bf16 %v241_v42, %v241_v42 }
  0x24   : > { %337 = vmatmul.msk.bf16.vlgmr.msra.gmra.mxu0 %vm248_vm2, %v242_v43 }
  0xa1   : > { %v264_v45 = vpop.f32.mrf.mxu0 }
  0xa2   : > { %v265_v46 = vadd.f32 %v349_v44, %v264_v45 }
  0xa4   : > { %269 = vst.msk [vmem:[%s168_s25] sm:$0x3f] %vm268_vm3, %v265_v46 }
  0xa9   : > { %v266_v47 = vpop.f32.mrf.mxu0 }
  0xaa PF: > { %s13_s12 = sadd.s32 1, %s356_s12  }
  0xab   : > { %p10_p4 = scmp.ge.s32.totalorder %s13_s12, 4  }
  0xad   :  { %12 = sbr.rel (!%p10_p4) target bundleno = 1 (0x1), region = 65 }

// kernel: conv_stem_forward.5
= control target key start
LH: loop header
LB: loop body
LE: loop exit
PB: predicated region body
PF: predicated region fallthrough
CT: control target
= control target key end

     0   :  { %s1580_s12 = smov 0   ;;  %s1830_s0 = inlined_call_operand.vmem [shape: bf16[2,4,90,8], index: 0, kind: input, shape index: {}]   ;;  %s1831_s1 = inlined_call_operand.vmem [shape: bf16[9,8,8], index: 1, kind: input, shape index: {}]   ;;  %s1832_s2 = inlined_call_operand.vmem [shape: f32[1,8], index: 2, kind: input, shape index: {}]   ;;  %s1833_s3 = inlined_call_operand.vmem [shape: bf16[2,72,8], index: 3, kind: output, shape index: {}]  }
   0x1 LB: > { %s1251_s13 = sadd.s32 4294967295, %s1558_s12   ;;  %p1255_p0 = scmp.ge.s32.totalorder %s1558_s12, 1  ;;  %s1558_s12 = sphi %s1580_s12, %s13_s12  }
   0x2   : > { %p137_p1 = scmp.lt.s32.totalorder %s1558_s12, 3 }
   0x4   : > { %p138_p2 = pnand %p1255_p0, %p137_p1 }
   0x5   : > { %p161_p3 = scmp.lt.s32.totalorder (!%p138_p2), %s1251_s13, 1 }
   0x6   : > { %141 = sbr.rel (%p138_p2) target bundleno = 340 (0x154), region = 32 }
   0xb   : > { %v1267_v0 = vld [vmem:[%s1831_s1 + $0x4] sm:$0xf]  ;;  %vm233_vm0 = vcmask 1043456   ;;  %v1310_v2 = vld [vmem:[%s1831_s1 + $0x8] sm:$0xf]  ;;  %s1835_s13 = smov (!%p161_p3, %s1251_s13), 1 }
   0xc   : > { %v235_v1 = vsel %vm233_vm0, %v1267_v0, 0  ;;  %v181_v3 = vld [vmem:[%s1831_s1] sm:$0xf]  ;;  %v437_v4 = vsel %vm233_vm0, %v1310_v2, 0  ;;  %v1345_v6 = vld [vmem:[%s1831_s1 + $0xc] sm:$0xf] }
   0xd   : > { %1535 = vmatpush.bf16.msra.mxu1 %v235_v1  ;;  %1536 = vmatpush.bf16.msra.mxu2 %v235_v1  ;;  %v309_v5 = vsel %vm233_vm0, %v181_v3, 0  ;;  %v532_v7 = vsel %vm233_vm0, %v1345_v6, 0  ;;  %v1376_v8 = vld [vmem:[%s1831_s1 + $0x10] sm:$0xf]  ;;  %s1538_s24 = smul.u32 192, %s1835_s13  ;;  %vm217_vm1 = vcmask 64512  }
   0xe   : > { %1537 = vmatpush.bf16.msra.mxu3 %v235_v1  ;;  %244 = vmatpush.bf16.msra.mxu0 %v235_v1  ;;  %v627_v9 = vsel %vm233_vm0, %v1376_v8, 0  ;;  %v1434_v16 = vld [vmem:[%s1831_s1 + $0x18] sm:$0xf]  ;;  %v1466_v18 = vld [vmem:[%s1831_s1 + $0x1c] sm:$0xf]  ;;  %vm1085_vm3 = vcmask 1046528  }
   0xf   : > { %s1614_s27 = scalar_lea.vmem %s1830_s0, %s1538_s24  ;;  %v899_v17 = vsel %vm233_vm0, %v1434_v16, 0  ;;  %v1035_v19 = vsel %vm233_vm0, %v1466_v18, 0  ;;  %v1408_v20 = vld [vmem:[%s1831_s1 + $0x14] sm:$0xf]  ;;  %v1492_v21 = vld [vmem:[%s1831_s1 + $0x20] sm:$0xf] }
  0x10   : > { %v1505_v10 = vld [vmem:[%s1614_s27 + $0x38] sm:$0xff]  ;;  %v1506_v11 = vld [vmem:[%s1614_s27 + $0x40] sm:$0xff]  ;;  %v1266_v12 = vld [vmem:[%s1614_s27 + $0x50] sm:$0xf]  ;;  %v763_v22 = vsel %vm233_vm0, %v1408_v20, 0  ;;  %v1111_v23 = vsel %vm233_vm0, %v1492_v21, 0 }
  0x11   : > { %446 = vmatpush.bf16.msrb.mxu2 %v437_v4  ;;  %318 = vmatpush.bf16.msrb.mxu1 %v309_v5  ;;  %v211_v13 = vunpack.c.l.b16 %v1266_v12  ;;  %v1504_v14 = vld [vmem:[%s1614_s27 + $0x30] sm:$0xff]  ;;  %v1507_v24 = vld [vmem:[%s1614_s27 + $0x48] sm:$0xff]  ;;  %v1500_v25 = vld [vmem:[%s1614_s27] sm:$0xff]  ;;  %vm381_vm2 = vsmask.f32 7424  ;;  %s1539_s11 = smul.u32 36, %s1835_s13 }
  0x12   : > { %541 = vmatpush.bf16.msrb.mxu3 %v532_v7  ;;  %636 = vmatpush.bf16.msrb.mxu0 %v627_v9  ;;  %v1508_v26 = vld [vmem:[%s1614_s27] sm:$0xff]  ;;  %v1517_v27 = vld [vmem:[%s1614_s27 + $0x90] sm:$0xff]  ;;  %v1509_v29 = vld [vmem:[%s1614_s27 + $0x8] sm:$0xff]  ;;  %vm1186_vm4 = vcmask 60416  }
  0x13   : > { %1285 = vmatmul.msk.bf16.vlgmr.msra.gmra.mxu1 %vm217_vm1, %v1505_v10  ;;  %1286 = vmatmul.msk.bf16.vlgmr.msra.gmra.mxu2 %vm217_vm1, %v1506_v11  ;;  %v216_v15 = vpack.c.b16 %v211_v13, %v211_v13  ;;  %v1513_v28 = vld [vmem:[%s1614_s27 + $0x60] sm:$0xff]  ;;  %v385_v30 = vshll.u32 %v1508_v26, 16  ;;  %v383_v31 = vshrl.u32 %v1508_v26, 16  ;;  %v390_v33 = vshll.u32 %v1509_v29, 16  ;;  %v1501_v36 = vld [vmem:[%s1614_s27 + $0x8] sm:$0xff]  ;;  %v1518_v38 = vld [vmem:[%s1614_s27 + $0x98] sm:$0xff]  ;;  %s1792_s16 = scalar_lea.vmem %s1833_s3, %s1539_s11 }
  0x14   : > { %1284 = vmatmul.msk.bf16.vlgmr.msra.gmra.mxu0 %vm217_vm1, %v1504_v14  ;;  %v1514_v39 = vld [vmem:[%s1614_s27 + $0x68] sm:$0xff]  ;;  %v1510_v40 = vld [vmem:[%s1614_s27 + $0x10] sm:$0xff]  ;;  %v394_v41 = vshrl.u32 %v1509_v29, 16  ;;  %v1519_v47 = vld [vmem:[%s1614_s27 + $0xa0] sm:$0xff] }
  0x15   : > { %1288 = vmatmul.msk.bf16.vlgmr.msra.gmra.mxu3 %vm217_vm1, %v216_v15  ;;  %908 = vmatpush.bf16.msra.mxu2 %v899_v17  ;;  %v387_v32 = vrot.slane %v385_v30, 1  ;;  %v392_v35 = vrot.slane %v390_v33, 1  ;;  %v398_v42 = vshll.u32 %v1510_v40, 16  ;;  %v1502_v45 = vld [vmem:[%s1614_s27 + $0x10] sm:$0xff]  ;;  %v1511_v49 = vld [vmem:[%s1614_s27 + $0x18] sm:$0xff]  ;;  %v402_v50 = vshrl.u32 %v1510_v40, 16 }
  0x16   : > { %1044 = vmatpush.bf16.msra.mxu3 %v1035_v19  ;;  %772 = vmatpush.bf16.msra.mxu1 %v763_v22  ;;  %v1515_v48 = vld [vmem:[%s1614_s27 + $0x70] sm:$0xff]  ;;  %v406_v51 = vshll.u32 %v1511_v49, 16  ;;  %v1503_v54 = vld [vmem:[%s1614_s27 + $0x18] sm:$0xff]  ;;  %v1520_v56 = vld [vmem:[%s1614_s27 + $0xa8] sm:$0xff]  ;;  %v410_v62 = vshrl.u32 %v1511_v49, 16 }
  0x17   : > { %1120 = vmatpush.bf16.msra.mxu0 %v1111_v23  ;;  %v388_v34 = vor.u32 %v387_v32, %v383_v31  ;;  %v396_v43 = vor.u32 %v394_v41, %v392_v35  ;;  %v400_v44 = vrot.slane %v398_v42, 1  ;;  %v1329_v57 = vld [vmem:[%s1614_s27 + $0x20] sm:$0xf]  ;;  %v1512_v58 = vld [vmem:[%s1614_s27 + $0x20] sm:$0x10]  ;;  %v1516_v59 = vld [vmem:[%s1614_s27 + $0x78] sm:$0xff] }
  0x18   : > { %v408_v53 = vrot.slane %v406_v51, 1  ;;  %v1330_v60 = vor.u32 %v1512_v58, %v1329_v57  ;;  %v180_v61 = vld [vmem:[%s1614_s27 + $0x20] sm:$0xf]  ;;  %v1375_v0 = vld [vmem:[%s1614_s27 + $0xb0] sm:$0xf]  ;;  %v1530_v13 = vld [vmem:[%s1614_s27 + $0x34] sm:$0xff] }
  0x19   : > { %v393_v37 = vsel %vm381_vm2, %v388_v34, %v392_v35  ;;  %v401_v46 = vsel %vm381_vm2, %v396_v43, %v400_v44  ;;  %v404_v52 = vor.u32 %v402_v50, %v400_v44  ;;  %v287_v1 = vunpack.c.l.b16 %v180_v61  ;;  %v1344_v2 = vld [vmem:[%s1614_s27 + $0x80] sm:$0xf]  ;;  %v1554_v12 = vld [vmem:[%s1614_s27 + $0x4] sm:$0xe]  ;;  %v1522_v14 = vld [vmem:[%s1614_s27 + $0x68] sm:$0xff] }
  0x1a   : > { %v414_v63 = vshll.u32 %v1330_v60, 16  ;;  %v412_v3 = vor.u32 %v410_v62, %v408_v53  ;;  %v605_v5 = vunpack.c.l.b16 %v1375_v0  ;;  %v510_v6 = vunpack.c.l.b16 %v1344_v2  ;;  %v1521_v9 = vld [vmem:[%s1614_s27 + $0x60] sm:$0xff]  ;;  %v1553_v17 = vld [vmem:[%s1614_s27 + $0x4] sm:$0xf0]  ;;  %v1704_v49 = vld [vmem:[%s1614_s27 + $0x14] sm:$0xff] }
  0x1b   : > { %v409_v55 = vsel %vm381_vm2, %v404_v52, %v408_v53  ;;  %v292_v7 = vpack.c.b16 %v287_v1, %v287_v1  ;;  %v711_v15 = vshll.u32 %v1521_v9, 16  ;;  %v807_v16 = vld [vmem:[%s1614_s27 + $0x4] sm:$0xff]   ;;  %v1531_v18 = vld [vmem:[%s1614_s27 + $0x3c] sm:$0xff]  ;;  %v983_v19 = vshll.u32 %v1530_v13, 16  ;;  %v1533_v62 = vld [vmem:[%s1614_s27 + $0x4c] sm:$0xff] }
  0x1c   : > { %v416_v4 = vrot.slane %v414_v63, 1  ;;  %v610_v10 = vpack.c.b16 %v605_v5, %v605_v5  ;;  %v515_v11 = vpack.c.b16 %v510_v6, %v510_v6  ;;  %v709_v20 = vshrl.u32 %v1521_v9, 16  ;;  %v1532_v42 = vld [vmem:[%s1614_s27 + $0x44] sm:$0xff]  ;;  %v1524_v61 = vld [vmem:[%s1614_s27 + $0x78] sm:$0xff] }
  0x1d   : > { %v713_v21 = vrot.slane %v711_v15, 1  ;;  %v716_v22 = vshll.u32 %v1522_v14, 16  ;;  %v1555_v23 = vor.u32 %v1554_v12, %v1553_v17  ;;  %v985_v26 = vrot.slane %v983_v19, 1  ;;  %v1719_v5 = vld [vmem:[%s1614_s27 + $0x1c] sm:$0xff]  ;;  %v1525_v17 = vld [vmem:[%s1614_s27 + $0x80] sm:$0x10] }
  0x1e   : > { %v417_v8 = vsel %vm381_vm2, %v412_v3, %v416_v4  ;;  %v847_v40 = vshll.u32 %v807_v16, 16  ;;  %v720_v41 = vshrl.u32 %v1522_v14, 16  ;;  %v845_v44 = vshrl.u32 %v807_v16, 16  ;;  %v1427_v16 = vld [vmem:[%s1614_s27 + $0x80] sm:$0xf] }
  0x1f   : > { %v714_v29 = vor.u32 %v713_v21, %v709_v20  ;;  %v718_v30 = vrot.slane %v716_v22, 1  ;;  %v1086_v31 = vrot.slane %v1555_v23, 1  ;;  %v732_v0 = vshll.u32 %v1524_v61, 16  ;;  %v1485_v22 = vld [vmem:[%s1614_s27 + $0x54] sm:$0xf] }
  0x20   : > { %v860_v2 = vshll.u32 %v1704_v49, 16  ;;  %v1000_v3 = vshrl.u32 %v1532_v42, 16  ;;  %v1428_v21 = vor.u32 %v1525_v17, %v1427_v16  ;;  %v1534_v23 = vld [vmem:[%s1614_s27 + $0x54] sm:$0x10] }
  0x21   : > { %v722_v50 = vor.u32 %v720_v41, %v718_v30 }
  0x22   : > { %v862_v9 = vrot.slane %v860_v2, 1 }
  0x23   : > { %1287 = vmatmul.msk.bf16.gmra.mxu2 %vm217_vm1, %v1507_v24  ;;  %1305 = vmatmul.msk.bf16.vlgmr.msrb.gmra.mxu1 %vm217_vm1, %v1500_v25  ;;  %v418_v24 = vshrl.u32 %v1330_v60, 16  ;;  %v981_v25 = vshrl.u32 %v1530_v13, 16 }
  0x24   : > { %1393 = vmatmul.msk.bf16.vlgmr.msrb.gmra.mxu0 %vm217_vm1, %v1517_v27  ;;  %v988_v27 = vshll.u32 %v1531_v18, 16 }
  0x25   : > { %1362 = vmatmul.msk.bf16.vlgmr.msrb.gmra.mxu3 %vm217_vm1, %v1513_v28  ;;  %v1526_v28 = vld [vmem:[%s1614_s27 + $0xc] sm:$0xff]  ;;  %v420_v33 = vor.u32 %v418_v24, %v416_v4  ;;  %v986_v34 = vor.u32 %v985_v26, %v981_v25  ;;  %v1004_v4 = vshll.u32 %v1533_v62, 16  ;;  %v736_v25 = vshrl.u32 %v1524_v61, 16 }
  0x26   : > { %v1087_v32 = vrot.slane %v1526_v28, 1  ;;  %v990_v35 = vrot.slane %v988_v27, 1  ;;  %v856_v1 = vshrl.u32 %v1526_v28, 16  ;;  %v740_v26 = vshll.u32 %v1428_v21, 16 }
  0x27   : > { %v1006_v12 = vrot.slane %v1004_v4, 1  ;;  %v1486_v27 = vor.u32 %v1534_v23, %v1485_v22  ;;  %v744_v61 = vshrl.u32 %v1428_v21, 16 }
  0x33   : > { %1306 = vmatmul.msk.bf16.gmra.mxu1 %vm217_vm1, %v1501_v36  ;;  %1331 = vmatmul.msk.bf16.vlgmr.msrb.gmra.mxu2 %vm217_vm1, %v393_v37  ;;  %v719_v36 = vsel %vm381_vm2, %v714_v29, %v718_v30  ;;  %v1088_v37 = vsel %vm1085_vm3, %v1086_v31, %v1087_v32  ;;  %v864_v29 = vshrl.u32 %v1704_v49, 16  ;;  %v868_v30 = vshll.u32 %v1719_v5, 16  ;;  %v1449_v31 = vld [vmem:[%s1614_s27 + $0x24] sm:$0xf] }
  0x34   : > { %1394 = vmatmul.msk.bf16.gmra.mxu0 %vm217_vm1, %v1518_v38  ;;  %v991_v38 = vsel %vm381_vm2, %v986_v34, %v990_v35 }
  0x35   : > { %1363 = vmatmul.msk.bf16.gmra.mxu3 %vm217_vm1, %v1514_v39  ;;  %v1523_v39 = vld [vmem:[%s1614_s27 + $0x70] sm:$0xff]  ;;  %v870_v41 = vrot.slane %v868_v30, 1 }
  0x36   : > { %v724_v43 = vshll.u32 %v1523_v39, 16  ;;  %v728_v63 = vshrl.u32 %v1523_v39, 16  ;;  %v742_v39 = vrot.slane %v740_v26, 1 }
  0x38   : > { %v726_v51 = vrot.slane %v724_v43, 1  ;;  %v746_v2 = vor.u32 %v744_v61, %v742_v39 }
  0x3a   : > { %v727_v57 = vsel %vm381_vm2, %v722_v50, %v726_v51  ;;  %v730_v6 = vor.u32 %v728_v63, %v726_v51 }
  0x43   : > { %1307 = vmatmul.msk.bf16.gmra.mxu1 %vm217_vm1, %v1502_v45  ;;  %1332 = vmatmul.msk.bf16.gmra.mxu2 %vm217_vm1, %v401_v46  ;;  %v849_v45 = vrot.slane %v847_v40, 1  ;;  %v852_v46 = vshll.u32 %v1526_v28, 16  ;;  %v866_v40 = vor.u32 %v864_v29, %v862_v9 }
  0x44   : > { %1395 = vmatmul.msk.bf16.gmra.mxu0 %vm217_vm1, %v1519_v47  ;;  %v992_v47 = vshrl.u32 %v1531_v18, 16 }
  0x45   : > { %1364 = vmatmul.msk.bf16.gmra.mxu3 %vm217_vm1, %v1515_v48  ;;  %v996_v48 = vshll.u32 %v1532_v42, 16  ;;  %v850_v52 = vor.u32 %v849_v45, %v845_v44  ;;  %v854_v53 = vrot.slane %v852_v46, 1 }
  0x47   : > { %v855_v58 = vsel %vm381_vm2, %v850_v52, %v854_v53 }
  0x53   : > { %1308 = vmatmul.msk.bf16.gmra.mxu1 %vm217_vm1, %v1503_v54  ;;  %1333 = vmatmul.msk.bf16.gmra.mxu2 %vm217_vm1, %v409_v55  ;;  %v1089_v54 = vrot.slane %v1704_v49, 1  ;;  %v994_v55 = vor.u32 %v992_v47, %v990_v35  ;;  %v1008_v35 = vshrl.u32 %v1533_v62, 16 }
  0x54   : > { %1396 = vmatmul.msk.bf16.gmra.mxu0 %vm217_vm1, %v1520_v56  ;;  %v998_v56 = vrot.slane %v996_v48, 1  ;;  %v871_v48 = vsel %vm381_vm2, %v866_v40, %v870_v41 }
  0x55   : > { %1365 = vmatmul.msk.bf16.gmra.mxu3 %vm217_vm1, %v1516_v59  ;;  %v1090_v59 = vsel %vm1085_vm3, %v1087_v32, %v1089_v54  ;;  %v1529_v32 = vld [vmem:[%s1614_s27 + $0x24] sm:$0x10]  ;;  %v1010_v44 = vor.u32 %v1008_v35, %v1006_v12 }
  0x56   : > { %v999_v60 = vsel %vm381_vm2, %v994_v55, %v998_v56 }
  0x63   : > { %1309 = vmatmul.msk.bf16.gmra.mxu1 %vm217_vm1, %v292_v7  ;;  %1334 = vmatmul.msk.bf16.gmra.mxu2 %vm217_vm1, %v417_v8  ;;  %v734_v7 = vrot.slane %v732_v0, 1  ;;  %v858_v8 = vor.u32 %v856_v1, %v854_v53  ;;  %v1016_v1 = vshrl.u32 %v1486_v27, 16 }
  0x64   : > { %1397 = vmatmul.msk.bf16.gmra.mxu0 %vm217_vm1, %v610_v10  ;;  %v1091_v10 = vrot.slane %v1719_v5, 1 }
  0x65   : > { %1366 = vmatmul.msk.bf16.gmra.mxu3 %vm217_vm1, %v515_v11  ;;  %v1002_v11 = vor.u32 %v1000_v3, %v998_v56  ;;  %v735_v14 = vsel %vm381_vm2, %v730_v6, %v734_v7  ;;  %v863_v15 = vsel %vm381_vm2, %v858_v8, %v862_v9  ;;  %v872_v56 = vshrl.u32 %v1719_v5, 16 }
  0x66   : > { %v1092_v19 = vsel %vm1085_vm3, %v1089_v54, %v1091_v10 }
  0x67   : > { %v1007_v20 = vsel %vm381_vm2, %v1002_v11, %v1006_v12  ;;  %v874_v62 = vor.u32 %v872_v56, %v870_v41 }
  0x73   : > { %1335 = vmatmul.msk.bf16.gmra.mxu2 %vm217_vm1, %v420_v33  ;;  %1429 = vmatmul.msk.bf16.vlgmr.msra.gmra.mxu1 %vm217_vm1, %v719_v36  ;;  %v1012_v36 = vshll.u32 %v1486_v27, 16 }
  0x74   : > { %1493 = vmatmul.msk.bf16.vlgmr.msra.gmra.mxu0 %vm217_vm1, %v1088_v37  ;;  %v1450_v37 = vor.u32 %v1529_v32, %v1449_v31 }
  0x75   : > { %1487 = vmatmul.msk.bf16.vlgmr.msra.gmra.mxu3 %vm217_vm1, %v991_v38  ;;  %v738_v38 = vor.u32 %v736_v25, %v734_v7  ;;  %v1014_v45 = vrot.slane %v1012_v36, 1 }
  0x76   : > { %v1093_v42 = vrot.slane %v1450_v37, 1  ;;  %v880_v17 = vshrl.u32 %v1450_v37, 16 }
  0x77   : > { %v743_v47 = vsel %vm381_vm2, %v738_v38, %v742_v39  ;;  %v1015_v53 = vsel %vm381_vm2, %v1010_v44, %v1014_v45  ;;  %v1018_v9 = vor.u32 %v1016_v1, %v1014_v45 }
  0x78   : > { %v1094_v52 = vsel %vm1085_vm3, %v1091_v10, %v1093_v42 }
  0x83   : > { %1430 = vmatmul.msk.bf16.gmra.mxu1 %vm217_vm1, %v727_v57  ;;  %1451 = vmatmul.msk.bf16.vlgmr.msra.gmra.mxu2 %vm217_vm1, %v855_v58  ;;  %v876_v57 = vshll.u32 %v1450_v37, 16 }
  0x84   : > { %1494 = vmatmul.msk.bf16.gmra.mxu0 %vm217_vm1, %v1090_v59 }
  0x85   : > { %1488 = vmatmul.msk.bf16.gmra.mxu3 %vm217_vm1, %v999_v60  ;;  %v878_v63 = vrot.slane %v876_v57, 1 }
  0x87   : > { %v879_v4 = vsel %vm381_vm2, %v874_v62, %v878_v63 }
  0x90   : > { %v1722_v13 = vpop.f32.mrf.mxu1 }
  0x91   : > { %v246_v18 = vpop.f32.mrf.mxu0 }
  0x93   : > { %1431 = vmatmul.msk.bf16.gmra.mxu1 %vm217_vm1, %v735_v14  ;;  %1452 = vmatmul.msk.bf16.gmra.mxu2 %vm217_vm1, %v863_v15 }
  0x94   : > { %1495 = vmatmul.msk.bf16.gmra.mxu0 %vm217_vm1, %v1092_v19 }
  0x95   : > { %1489 = vmatmul.msk.bf16.gmra.mxu3 %vm217_vm1, %v1007_v20  ;;  %v882_v20 = vor.u32 %v880_v17, %v878_v63 }
  0x96   : > { %v1735_v24 = vpop.f32.mrf.mxu2 }
  0x98   : > { %v253_v28 = vpop.f32.mrf.mxu1  ;;  %v1742_v33 = vpop.f32.mrf.mxu3 }
  0x99   : > { %v248_v34 = vpop.f32.mrf.mxu0 }
  0x9e   : > { %v258_v43 = vpop.f32.mrf.mxu2 }
  0xa0   : > { %v320_v46 = vpop.f32.mrf.mxu1  ;;  %v268_v50 = vpop.f32.mrf.mxu3 }
  0xa1   : > { %v321_v49 = vadd.f32 %v320_v46, %v246_v18  ;;  %v638_v51 = vpop.f32.mrf.mxu0 }
  0xa3   : > { %1432 = vmatmul.msk.bf16.gmra.mxu1 %vm217_vm1, %v743_v47  ;;  %1453 = vmatmul.msk.bf16.gmra.mxu2 %vm217_vm1, %v871_v48 }
  0xa4   : > { %1496 = vmatmul.msk.bf16.gmra.mxu0 %vm217_vm1, %v1094_v52 }
  0xa5   : > { %1490 = vmatmul.msk.bf16.gmra.mxu3 %vm217_vm1, %v1015_v53 }
  0xa6   : > { %v261_v54 = vpop.f32.mrf.mxu2 }
  0xa8   : > { %v322_v55 = vpop.f32.mrf.mxu1  ;;  %v543_v59 = vpop.f32.mrf.mxu3 }
  0xa9   : > { %v323_v58 = vadd.f32 %v322_v55, %v248_v34  ;;  %v640_v60 = vpop.f32.mrf.mxu0 }
  0xae   : > { %v263_v0 = vpop.f32.mrf.mxu2 }
  0xb0   : > { %v325_v3 = vpop.f32.mrf.mxu1  ;;  %v545_v7 = vpop.f32.mrf.mxu3 }
  0xb1   : > { %v326_v6 = vadd.f32 %v325_v3, %v1722_v13  ;;  %v643_v8 = vpop.f32.mrf.mxu0 }
  0xb3   : > { %1433 = vmatmul.msk.bf16.gmra.mxu1 %vm217_vm1, %v746_v2  ;;  %1454 = vmatmul.msk.bf16.gmra.mxu2 %vm217_vm1, %v879_v4 }
  0xb4   : > { %1497 = vmatmul.msk.bf16.gmra.mxu0 %vm217_vm1, %v1093_v42 }
  0xb5   : > { %1491 = vmatmul.msk.bf16.gmra.mxu3 %vm217_vm1, %v1018_v9 }
  0xb6   : > { %v448_v5 = vpop.f32.mrf.mxu2 }
  0xb7   : > { %v472_v10 = vadd.f32 %v448_v5, %v321_v49 }
  0xb8   : > { %v327_v11 = vpop.f32.mrf.mxu1  ;;  %v548_v15 = vpop.f32.mrf.mxu3 }
  0xb9   : > { %v567_v12 = vadd.f32 %v543_v59, %v472_v10  ;;  %v328_v14 = vadd.f32 %v327_v11, %v253_v28  ;;  %v645_v16 = vpop.f32.mrf.mxu0 }
  0xbb   : > { %v1759_v13 = vadd.f32 %v638_v51, %v567_v12 }
  0xbe   : > { %v450_v18 = vpop.f32.mrf.mxu2 }
  0xbf   : > { %v473_v19 = vadd.f32 %v450_v18, %v323_v58 }
  0xc0   : > { %v330_v21 = vpop.f32.mrf.mxu1  ;;  %v550_v25 = vpop.f32.mrf.mxu3 }
  0xc1   : > { %v568_v22 = vadd.f32 %v545_v7, %v473_v19  ;;  %v331_v23 = vadd.f32 %v330_v21, %v1735_v24  ;;  %v648_v26 = vpop.f32.mrf.mxu0 }
  0xc3   : > { %1455 = vmatmul.msk.bf16.gmra.mxu2 %vm217_vm1, %v882_v20  ;;  %v1763_v27 = vadd.f32 %v640_v60, %v568_v22 }
  0xc6   : > { %v453_v29 = vpop.f32.mrf.mxu2 }
  0xc7   : > { %v474_v28 = vadd.f32 %v453_v29, %v326_v6  ;;  %v1784_v29 = vld [vmem:[%s1832_s2] ss:$0 sm:$0xff] }
  0xc8   : > { %v332_v30 = vpop.f32.mrf.mxu1  ;;  %v553_v34 = vpop.f32.mrf.mxu3 }
  0xc9   : > { %v569_v31 = vadd.f32 %v548_v15, %v474_v28  ;;  %v333_v32 = vadd.f32 %v332_v30, %v258_v43  ;;  %v650_v35 = vpop.f32.mrf.mxu0 }
  0xcb   : > { %v1765_v36 = vadd.f32 %v643_v8, %v569_v31 }
  0xce   : > { %v455_v37 = vpop.f32.mrf.mxu2 }
  0xcf   : > { %v475_v38 = vadd.f32 %v455_v37, %v328_v14 }
  0xd0   : > { %v335_v39 = vpop.f32.mrf.mxu1  ;;  %v555_v41 = vpop.f32.mrf.mxu3 }
  0xd1   : > { %v570_v40 = vadd.f32 %v550_v25, %v475_v38  ;;  %v336_v24 = vadd.f32 %v335_v39, %v261_v54  ;;  %v653_v42 = vpop.f32.mrf.mxu0 }
  0xd3   : > { %v1767_v44 = vadd.f32 %v645_v16, %v570_v40 }
  0xd6   : > { %v458_v45 = vpop.f32.mrf.mxu2 }
  0xd7   : > { %v476_v46 = vadd.f32 %v458_v45, %v331_v23 }
  0xd8   : > { %v337_v47 = vpop.f32.mrf.mxu1  ;;  %v558_v50 = vpop.f32.mrf.mxu3 }
  0xd9   : > { %v571_v48 = vadd.f32 %v553_v34, %v476_v46  ;;  %v338_v49 = vadd.f32 %v337_v47, %v263_v0  ;;  %v655_v43 = vpop.f32.mrf.mxu0 }
  0xdb   : > { %v1769_v51 = vadd.f32 %v648_v26, %v571_v48 }
  0xde   : > { %v460_v52 = vpop.f32.mrf.mxu2 }
  0xdf   : > { %v477_v53 = vadd.f32 %v460_v52, %v333_v32 }
  0xe0   : > { %v340_v55 = vpop.f32.mrf.mxu1  ;;  %v560_v54 = vpop.f32.mrf.mxu3 }
  0xe1   : > { %v572_v56 = vadd.f32 %v555_v41, %v477_v53  ;;  %v341_v57 = vadd.f32 %v340_v55, %v1742_v33  ;;  %v658_v58 = vpop.f32.mrf.mxu0 }
  0xe3   : > { %v1772_v59 = vadd.f32 %v650_v35, %v572_v56 }
  0xe6   : > { %v463_v60 = vpop.f32.mrf.mxu2 }
  0xe7   : > { %v478_v61 = vadd.f32 %v463_v60, %v336_v24 }
  0xe8   : > { %v342_v62 = vpop.f32.mrf.mxu1  ;;  %v563_v1 = vpop.f32.mrf.mxu3 }
  0xe9   : > { %v573_v63 = vadd.f32 %v558_v50, %v478_v61  ;;  %v660_v0 = vpop.f32.mrf.mxu0 }
  0xeb   : > { %v1774_v2 = vadd.f32 %v653_v42, %v573_v63 }
  0xee   : > { %v465_v3 = vpop.f32.mrf.mxu2 }
  0xef   : > { %v479_v4 = vadd.f32 %v465_v3, %v338_v49 }
  0xf0   : > { %v774_v6 = vpop.f32.mrf.mxu1  ;;  %v565_v8 = vpop.f32.mrf.mxu3 }
  0xf1   : > { %v574_v7 = vadd.f32 %v560_v54, %v479_v4  ;;  %v1122_v9 = vpop.f32.mrf.mxu0  ;;  %v798_v21 = vadd.f32 %v774_v6, %v1759_v13 }
  0xf3   : > { %v1776_v5 = vadd.f32 %v655_v43, %v574_v7 }
  0xf6   : > { %v468_v33 = vpop.f32.mrf.mxu2 }
  0xf7   : > { %v480_v10 = vadd.f32 %v468_v33, %v341_v57 }
  0xf8   : > { %v776_v11 = vpop.f32.mrf.mxu1  ;;  %v1046_v14 = vpop.f32.mrf.mxu3 }
  0xf9   : > { %v575_v12 = vadd.f32 %v563_v1, %v480_v10  ;;  %v1124_v15 = vpop.f32.mrf.mxu0  ;;  %v799_v32 = vadd.f32 %v776_v11, %v1763_v27 }
  0xfb   : > { %v1778_v16 = vadd.f32 %v658_v58, %v575_v12 }
  0xfe   : > { %v470_v17 = vpop.f32.mrf.mxu2 }
 0x100   : > { %v779_v18 = vpop.f32.mrf.mxu1  ;;  %v1048_v19 = vpop.f32.mrf.mxu3 }
 0x101   : > { %v1127_v20 = vpop.f32.mrf.mxu0  ;;  %v800_v42 = vadd.f32 %v779_v18, %v1765_v36 }
 0x106   : > { %v910_v22 = vpop.f32.mrf.mxu2 }
 0x107   : > { %v934_v23 = vadd.f32 %v910_v22, %v798_v21 }
 0x108   : > { %v781_v25 = vpop.f32.mrf.mxu1  ;;  %v1051_v28 = vpop.f32.mrf.mxu3 }
 0x109   : > { %v1070_v26 = vadd.f32 %v1046_v14, %v934_v23  ;;  %v1129_v30 = vpop.f32.mrf.mxu0  ;;  %v801_v56 = vadd.f32 %v781_v25, %v1767_v44 }
 0x10b   : > { %v1146_v31 = vadd.f32 %v1122_v9, %v1070_v26 }
 0x10d   : > { %v1159_v34 = vadd.f32 %v1784_v29, %v1146_v31 }
 0x10e   : > { %v912_v35 = vpop.f32.mrf.mxu2 }
 0x10f   : > { %v1168_v37 = vmax.f32 %v1159_v34, 0.0  ;;  %v935_v13 = vadd.f32 %v912_v35, %v799_v32 }
 0x110   : > { %v784_v38 = vpop.f32.mrf.mxu1  ;;  %v1053_v24 = vpop.f32.mrf.mxu3 }
 0x111   : > { %v1177_v39 = vpack.c.bf16 %v1168_v37, %v1168_v37  ;;  %v1071_v40 = vadd.f32 %v1048_v19, %v935_v13  ;;  %v1132_v41 = vpop.f32.mrf.mxu0  ;;  %v802_v3 = vadd.f32 %v784_v38, %v1769_v51 }
 0x113   : > { %1187 = vst.msk [vmem:[%s1792_s16] sm:$0xf] %vm1186_vm4, %v1177_v39  ;;  %v1147_v27 = vadd.f32 %v1124_v15, %v1071_v40 }
 0x115   : > { %v1160_v45 = vadd.f32 %v1784_v29, %v1147_v27 }
 0x116   : > { %v915_v46 = vpop.f32.mrf.mxu2 }
 0x117   : > { %v1169_v47 = vmax.f32 %v1160_v45, 0.0  ;;  %v936_v48 = vadd.f32 %v915_v46, %v800_v42 }
 0x118   : > { %v786_v49 = vpop.f32.mrf.mxu1  ;;  %v1056_v52 = vpop.f32.mrf.mxu3 }
 0x119   : > { %v1178_v50 = vpack.c.bf16 %v1169_v47, %v1169_v47  ;;  %v1072_v43 = vadd.f32 %v1051_v28, %v936_v48  ;;  %v1134_v53 = vpop.f32.mrf.mxu0  ;;  %v803_v14 = vadd.f32 %v786_v49, %v1772_v59 }
 0x11b   : > { %1188 = vst.msk [vmem:[%s1792_s16 + $0x4] sm:$0xf] %vm1186_vm4, %v1178_v50  ;;  %v1148_v55 = vadd.f32 %v1127_v20, %v1072_v43 }
 0x11d   : > { %v1161_v57 = vadd.f32 %v1784_v29, %v1148_v55 }
 0x11e   : > { %v917_v54 = vpop.f32.mrf.mxu2 }
 0x11f   : > { %v1170_v36 = vmax.f32 %v1161_v57, 0.0  ;;  %v937_v58 = vadd.f32 %v917_v54, %v801_v56 }
 0x120   : > { %v789_v60 = vpop.f32.mrf.mxu1  ;;  %v1058_v63 = vpop.f32.mrf.mxu3 }
 0x121   : > { %v1179_v61 = vpack.c.bf16 %v1170_v36, %v1170_v36  ;;  %v1073_v62 = vadd.f32 %v1053_v24, %v937_v58  ;;  %v1137_v1 = vpop.f32.mrf.mxu0  ;;  %v804_v26 = vadd.f32 %v789_v60, %v1774_v2 }
 0x123   : > { %1189 = vst.msk [vmem:[%s1792_s16 + $0x8] sm:$0xf] %vm1186_vm4, %v1179_v61  ;;  %v1149_v0 = vadd.f32 %v1129_v30, %v1073_v62 }
 0x125   : > { %v1162_v4 = vadd.f32 %v1784_v29, %v1149_v0 }
 0x126   : > { %v920_v6 = vpop.f32.mrf.mxu2 }
 0x127   : > { %v1171_v44 = vmax.f32 %v1162_v4, 0.0  ;;  %v938_v7 = vadd.f32 %v920_v6, %v802_v3 }
 0x128   : > { %v791_v8 = vpop.f32.mrf.mxu1  ;;  %v1061_v10 = vpop.f32.mrf.mxu3 }
 0x129   : > { %v1180_v9 = vpack.c.bf16 %v1171_v44, %v1171_v44  ;;  %v1074_v33 = vadd.f32 %v1056_v52, %v938_v7  ;;  %v1139_v11 = vpop.f32.mrf.mxu0  ;;  %v805_v39 = vadd.f32 %v791_v8, %v1776_v5 }
 0x12b   : > { %1190 = vst.msk [vmem:[%s1792_s16 + $0xc] sm:$0xf] %vm1186_vm4, %v1180_v9  ;;  %v1150_v12 = vadd.f32 %v1132_v41, %v1074_v33 }
 0x12d   : > { %v1163_v15 = vadd.f32 %v1784_v29, %v1150_v12 }
 0x12e   : > { %v922_v17 = vpop.f32.mrf.mxu2 }
 0x12f   : > { %v1172_v51 = vmax.f32 %v1163_v15, 0.0  ;;  %v939_v18 = vadd.f32 %v922_v17, %v803_v14 }
 0x130   : > { %v794_v19 = vpop.f32.mrf.mxu1  ;;  %v1063_v22 = vpop.f32.mrf.mxu3 }
 0x131   : > { %v1181_v20 = vpack.c.bf16 %v1172_v51, %v1172_v51  ;;  %v1075_v21 = vadd.f32 %v1058_v63, %v939_v18  ;;  %v1142_v23 = vpop.f32.mrf.mxu0  ;;  %v806_v47 = vadd.f32 %v794_v19, %v1778_v16 }
 0x133   : > { %1191 = vst.msk [vmem:[%s1792_s16 + $0x10] sm:$0xf] %vm1186_vm4, %v1181_v20  ;;  %v1151_v25 = vadd.f32 %v1134_v53, %v1075_v21 }
 0x135   : > { %v1164_v28 = vadd.f32 %v1784_v29, %v1151_v25 }
 0x136   : > { %v925_v30 = vpop.f32.mrf.mxu2 }
 0x137   : > { %v1173_v59 = vmax.f32 %v1164_v28, 0.0  ;;  %v940_v31 = vadd.f32 %v925_v30, %v804_v26 }
 0x138   : > { %v796_v32 = vpop.f32.mrf.mxu1  ;;  %v1066_v37 = vpop.f32.mrf.mxu3 }
 0x139   : > { %v1182_v34 = vpack.c.bf16 %v1173_v59, %v1173_v59  ;;  %v1076_v35 = vadd.f32 %v1061_v10, %v940_v31  ;;  %v1144_v13 = vpop.f32.mrf.mxu0 }
 0x13b   : > { %1192 = vst.msk [vmem:[%s1792_s16 + $0x14] sm:$0xf] %vm1186_vm4, %v1182_v34  ;;  %v1152_v38 = vadd.f32 %v1137_v1, %v1076_v35 }
 0x13d   : > { %v1165_v40 = vadd.f32 %v1784_v29, %v1152_v38 }
 0x13e   : > { %v927_v2 = vpop.f32.mrf.mxu2 }
 0x13f   : > { %v1174_v24 = vmax.f32 %v1165_v40, 0.0  ;;  %v941_v41 = vadd.f32 %v927_v2, %v805_v39 }
 0x140   : > { %v1068_v45 = vpop.f32.mrf.mxu3 }
 0x141   : > { %v1183_v27 = vpack.c.bf16 %v1174_v24, %v1174_v24  ;;  %v1077_v42 = vadd.f32 %v1063_v22, %v941_v41 }
 0x143   : > { %1193 = vst.msk [vmem:[%s1792_s16 + $0x18] sm:$0xf] %vm1186_vm4, %v1183_v27  ;;  %v1153_v46 = vadd.f32 %v1139_v11, %v1077_v42 }
 0x145   : > { %v1166_v48 = vadd.f32 %v1784_v29, %v1153_v46 }
 0x146   : > { %v930_v49 = vpop.f32.mrf.mxu2 }
 0x147   : > { %v1175_v50 = vmax.f32 %v1166_v48, 0.0  ;;  %v942_v5 = vadd.f32 %v930_v49, %v806_v47 }
 0x149   : > { %v1184_v43 = vpack.c.bf16 %v1175_v50, %v1175_v50  ;;  %v1078_v52 = vadd.f32 %v1066_v37, %v942_v5 }
 0x14b   : > { %1194 = vst.msk [vmem:[%s1792_s16 + $0x1c] sm:$0xf] %vm1186_vm4, %v1184_v43  ;;  %v1154_v53 = vadd.f32 %v1142_v23, %v1078_v52 }
 0x14d   : > { %v1167_v55 = vadd.f32 %v1784_v29, %v1154_v53 }
 0x14e   : > { %v932_v56 = vpop.f32.mrf.mxu2 }
 0x14f   : > { %v1176_v57 = vmax.f32 %v1167_v55, 0.0 }
 0x151   : > { %v1185_v54 = vpack.c.bf16 %v1176_v57, %v1176_v57 }
 0x153   : > { %1195 = vst.msk [vmem:[%s1792_s16 + $0x20] sm:$0xf] %vm1186_vm4, %v1185_v54 }
 0x154 PF: > { %s13_s12 = sadd.s32 1, %s1558_s12  }
 0x155   : > { %p10_p4 = scmp.ge.s32.totalorder %s13_s12, 4  }
 0x157   :  { %12 = sbr.rel (!%p10_p4) target bundleno = 1 (0x1), region = 73 }

// kernel: conv_stem_forward.6
= control target key start
LH: loop header
LB: loop body
LE: loop exit
PB: predicated region body
PF: predicated region fallthrough
CT: control target
= control target key end

     0   :  { %s808_s12 = smov 0   ;;  %s918_s0 = inlined_call_operand.vmem [shape: bf16[2,4,30,8], index: 0, kind: input, shape index: {}]   ;;  %s919_s1 = inlined_call_operand.vmem [shape: bf16[9,8,8], index: 1, kind: input, shape index: {}]   ;;  %s920_s2 = inlined_call_operand.vmem [shape: f32[1,8], index: 2, kind: input, shape index: {}]   ;;  %s921_s3 = inlined_call_operand.vmem [shape: bf16[2,20,8], index: 3, kind: output, shape index: {}]  }
   0x1 LB: > { %s683_s13 = sadd.s32 4294967295, %s786_s12   ;;  %p687_p0 = scmp.ge.s32.totalorder %s786_s12, 1  ;;  %s786_s12 = sphi %s808_s12, %s13_s12  }
   0x2   : > { %p137_p1 = scmp.lt.s32.totalorder %s786_s12, 3 }
   0x4   : > { %p138_p2 = pnand %p687_p0, %p137_p1 }
   0x5   : > { %p161_p3 = scmp.lt.s32.totalorder (!%p138_p2), %s683_s13, 1 }
   0x6   : > { %141 = sbr.rel (%p138_p2) target bundleno = 226 (0xe2), region = 32 }
   0xb   : > { %v694_v0 = vld [vmem:[%s919_s1 + $0x4] sm:$0xf]  ;;  %vm197_vm0 = vcmask 1043456   ;;  %v175_v2 = vld [vmem:[%s919_s1] sm:$0xf]  ;;  %s923_s13 = smov (!%p161_p3, %s683_s13), 1 }
   0xc   : > { %v199_v1 = vsel %vm197_vm0, %v694_v0, 0  ;;  %v707_v3 = vld [vmem:[%s919_s1 + $0x8] sm:$0xf]  ;;  %v234_v4 = vsel %vm197_vm0, %v175_v2, 0  ;;  %v713_v6 = vld [vmem:[%s919_s1 + $0xc] sm:$0xf] }
   0xd   : > { %208 = vmatpush.bf16.msra.mxu0 %v199_v1  ;;  %769 = vmatpush.bf16.msra.mxu1 %v199_v1  ;;  %v282_v5 = vsel %vm197_vm0, %v707_v3, 0  ;;  %vm190_vm1 = vcmask 64512   ;;  %v326_v7 = vsel %vm197_vm0, %v713_v6, 0  ;;  %v723_v8 = vld [vmem:[%s919_s1 + $0x10] sm:$0xf]  ;;  %s761_s24 = sshll.u32 %s923_s13, 6 }
   0xe   : > { %291 = vmatpush.bf16.msra.mxu2 %v282_v5  ;;  %335 = vmatpush.bf16.msra.mxu3 %v326_v7  ;;  %v370_v9 = vsel %vm197_vm0, %v723_v8, 0  ;;  %v734_v10 = vld [vmem:[%s919_s1 + $0x18] sm:$0xf]  ;;  %v745_v11 = vld [vmem:[%s919_s1 + $0x1c] sm:$0xf]  ;;  %s848_s4 = scalar_lea.vmem %s918_s0, %s761_s24  ;;  %vm576_vm4 = vcmask 1044480  }
   0xf   : > { %v484_v12 = vsel %vm197_vm0, %v734_v10, 0  ;;  %v547_v13 = vsel %vm197_vm0, %v745_v11, 0  ;;  %v731_v14 = vld [vmem:[%s919_s1 + $0x14] sm:$0xf]  ;;  %v756_v15 = vld [vmem:[%s919_s1 + $0x20] sm:$0xf] }
  0x10   : > { %v763_v16 = vld [vmem:[%s848_s4 + $0x10] sm:$0xff]  ;;  %v693_v17 = vld [vmem:[%s848_s4 + $0x18] sm:$0x3]  ;;  %v762_v18 = vld [vmem:[%s848_s4] sm:$0xff]  ;;  %v587_v19 = vsel %vm197_vm0, %v756_v15, 0  ;;  %v420_v27 = vsel %vm197_vm0, %v731_v14, 0 }
  0x11   : > { %243 = vmatpush.bf16.msrb.mxu1 %v234_v4  ;;  %379 = vmatpush.bf16.msrb.mxu0 %v370_v9  ;;  %v187_v20 = vunpack.c.l.b16 %v693_v17  ;;  %v254_v21 = vld [vmem:[%s848_s4 + $0x8] sm:$0x7]  ;;  %v864_v22 = vld [vmem:[%s848_s4 + $0x20] sm:$0xff]  ;;  %v261_v24 = vshrl.u32 %v762_v18, 16  ;;  %v263_v25 = vshll.u32 %v762_v18, 16  ;;  %v765_v40 = vld [vmem:[%s848_s4 + $0x30] sm:$0xff] }
  0x12   : > { %493 = vmatpush.bf16.msrb.mxu2 %v484_v12  ;;  %556 = vmatpush.bf16.msrb.mxu3 %v547_v13  ;;  %v258_v23 = vunpack.c.l.b16 %v254_v21  ;;  %vm260_vm2 = vsmask.f32 7424  ;;  %v712_v33 = vld [vmem:[%s848_s4 + $0x28] sm:$0x3]  ;;  %v748_v36 = vld [vmem:[%s848_s4 + $0x10] sm:$0xc] }
  0x13   : > { %699 = vmatmul.msk.bf16.vlgmr.msra.gmra.mxu0 %vm190_vm1, %v763_v16  ;;  %v189_v26 = vpack.c.b16 %v187_v20, %v187_v20  ;;  %718 = vmatmul.msk.bf16.vlgmr.msra.gmra.mxu3 %vm190_vm1, %v864_v22  ;;  %v265_v29 = vrot.slane %v263_v25, 1  ;;  %v316_v35 = vunpack.c.l.b16 %v712_v33  ;;  %v767_v37 = vld [vmem:[%s848_s4 + $0x10] sm:$0xf0]  ;;  %v752_v38 = vld [vmem:[%s848_s4 + $0x18] sm:$0xf]  ;;  %v401_v21 = vshll.u32 %v864_v22, 16 }
  0x14   : > { %v259_v28 = vpack.c.b16 %v258_v23, %v258_v23  ;;  %v768_v39 = vld [vmem:[%s848_s4 + $0x18] sm:$0x10]  ;;  %v443_v42 = vld [vmem:[%s848_s4] sm:$0xc]  ;;  %v444_v43 = vld [vmem:[%s848_s4 + $0x4] sm:$0xf]  ;;  %v749_v44 = vor.u32 %v767_v37, %v748_v36 }
  0x15   : > { %596 = vmatpush.bf16.msra.mxu0 %v587_v19  ;;  %700 = vmatmul.msk.bf16.vlgmr.msra.gmra.mxu1 %vm190_vm1, %v189_v26  ;;  %v266_v30 = vor.u32 %v265_v29, %v261_v24  ;;  %v318_v41 = vpack.c.b16 %v316_v35, %v316_v35  ;;  %v753_v45 = vor.u32 %v768_v39, %v752_v38  ;;  %v737_v47 = vld [vmem:[%s848_s4 + $0x8] sm:$0xf]  ;;  %v453_v48 = vunpack.c.l.b16 %v443_v42  ;;  %v766_v50 = vld [vmem:[%s848_s4 + $0x8] sm:$0x10]  ;;  %v722_v56 = vld [vmem:[%s848_s4 + $0x38] sm:$0x3] }
  0x16   : > { %v268_v31 = vshll.u32 %v259_v28, 16  ;;  %429 = vmatpush.bf16.msra.mxu1 %v420_v27  ;;  %v272_v46 = vshrl.u32 %v259_v28, 16  ;;  %v454_v49 = vunpack.c.l.b16 %v444_v43  ;;  %v524_v51 = vshrl.u32 %v749_v44, 16  ;;  %v174_v0 = vld [vmem:[%s848_s4 + $0x8] sm:$0x3]  ;;  %s770_s11 = smul.u32 12, %s923_s13 }
  0x17   : > { %v527_v52 = vshll.u32 %v749_v44, 16  ;;  %v532_v53 = vshrl.u32 %v753_v45, 16  ;;  %v535_v54 = vshll.u32 %v753_v45, 16  ;;  %v738_v58 = vor.u32 %v766_v50, %v737_v47  ;;  %v730_v10 = vld [vmem:[%s848_s4 + $0x28] sm:$0x7] }
  0x18   : > { %v270_v32 = vrot.slane %v268_v31, 1  ;;  %v457_v57 = vpack.c.b16 %v454_v49, %v453_v48  ;;  %v526_v59 = vrot.slane %v524_v51, 2  ;;  %v360_v63 = vunpack.c.l.b16 %v722_v56  ;;  %v570_v15 = vld [vmem:[%s848_s4] sm:$0x8]  ;;  %s170_s16 = scalar_lea.vmem %s921_s3, %s770_s11 }
  0x19   : > { %v529_v60 = vrot.slane %v527_v52, 3  ;;  %v534_v61 = vrot.slane %v532_v53, 2  ;;  %v537_v62 = vrot.slane %v535_v54, 3  ;;  %v469_v3 = vshrl.u32 %v738_v58, 16 }
  0x1a   : > { %v271_v34 = vsel %vm260_vm2, %v266_v30, %v270_v32  ;;  %v274_v55 = vor.u32 %v272_v46, %v270_v32  ;;  %v461_v1 = vshrl.u32 %v457_v57, 16  ;;  %v464_v2 = vshll.u32 %v457_v57, 16 }
  0x1b   : > { %708 = vmatmul.msk.bf16.vlgmr.msra.gmra.mxu2 %vm190_vm1, %v271_v34  ;;  %v472_v4 = vshll.u32 %v738_v58, 16  ;;  %v530_v5 = vor.u32 %v529_v60, %v526_v59  ;;  %v538_v6 = vor.u32 %v537_v62, %v534_v61  ;;  %v224_v7 = vunpack.c.l.b16 %v174_v0 }
  0x1c   : > { %vm459_vm3 = vsmask.f32 5376  ;;  %v362_v8 = vpack.c.b16 %v360_v63, %v360_v63  ;;  %v463_v9 = vrot.slane %v461_v1, 2  ;;  %v466_v11 = vrot.slane %v464_v2, 3 }
  0x1d   : > { %v471_v12 = vrot.slane %v469_v3, 2  ;;  %v474_v13 = vrot.slane %v472_v4, 3  ;;  %v539_v14 = vsel %vm459_vm3, %v530_v5, %v538_v6  ;;  %v226_v16 = vpack.c.b16 %v224_v7, %v224_v7 }
  0x1e   : > { %v397_v17 = vunpack.c.l.b16 %v730_v10  ;;  %v467_v19 = vor.u32 %v466_v11, %v463_v9  ;;  %v399_v26 = vshrl.u32 %v864_v22, 16  ;;  %v403_v27 = vrot.slane %v401_v21, 1  ;;  %v779_v10 = vld [vmem:[%s920_s2] ss:$0 sm:$0xff] }
  0x1f   : > { %v475_v20 = vor.u32 %v474_v13, %v471_v12  ;;  %v578_v30 = vrot.slane %v738_v58, 3  ;;  %vm623_vm5 = vcmask 60416   ;;  %vm626_vm6 = vcmask 58368  }
  0x20   : > { %v398_v23 = vpack.c.b16 %v397_v17, %v397_v17  ;;  %v404_v31 = vor.u32 %v403_v27, %v399_v26 }
  0x21   : > { %v476_v25 = vsel %vm459_vm3, %v467_v19, %v475_v20 }
  0x22   : > { %v406_v28 = vshll.u32 %v398_v23, 16  ;;  %v410_v22 = vshrl.u32 %v398_v23, 16 }
  0x23   : > { %728 = vmatmul.msk.bf16.vlgmr.msrb.gmra.mxu0 %vm190_vm1, %v765_v40  ;;  %719 = vmatmul.msk.bf16.gmra.mxu3 %vm190_vm1, %v318_v41 }
  0x24   : > { %v408_v32 = vrot.slane %v406_v28, 1 }
  0x25   : > { %705 = vmatmul.msk.bf16.vlgmr.msrb.gmra.mxu1 %vm190_vm1, %v762_v18  ;;  %v574_v18 = vunpack.c.l.b16 %v570_v15 }
  0x26   : > { %v409_v34 = vsel %vm260_vm2, %v404_v31, %v408_v32  ;;  %v412_v35 = vor.u32 %v410_v22, %v408_v32 }
  0x27   : > { %v575_v24 = vpack.c.b16 %v454_v49, %v574_v18 }
  0x29   : > { %v577_v29 = vrot.slane %v575_v24, 3 }
  0x2b   : > { %709 = vmatmul.msk.bf16.gmra.mxu2 %vm190_vm1, %v274_v55  ;;  %v579_v33 = vsel %vm576_vm4, %v577_v29, %v578_v30 }
  0x33   : > { %729 = vmatmul.msk.bf16.gmra.mxu0 %vm190_vm1, %v362_v8  ;;  %754 = vmatmul.msk.bf16.vlgmr.msrb.gmra.mxu3 %vm190_vm1, %v539_v14 }
  0x35   : > { %706 = vmatmul.msk.bf16.gmra.mxu1 %vm190_vm1, %v226_v16 }
  0x3b   : > { %739 = vmatmul.msk.bf16.vlgmr.msrb.gmra.mxu2 %vm190_vm1, %v476_v25 }
  0x43   : > { %757 = vmatmul.msk.bf16.vlgmr.msra.gmra.mxu0 %vm190_vm1, %v579_v33  ;;  %755 = vmatmul.msk.bf16.gmra.mxu3 %vm190_vm1, %v538_v6 }
  0x45   : > { %732 = vmatmul.msk.bf16.vlgmr.msra.gmra.mxu1 %vm190_vm1, %v409_v34 }
  0x4b   : > { %740 = vmatmul.msk.bf16.gmra.mxu2 %vm190_vm1, %v475_v20 }
  0x53   : > { %758 = vmatmul.msk.bf16.gmra.mxu0 %vm190_vm1, %v578_v30 }
  0x55   : > { %733 = vmatmul.msk.bf16.gmra.mxu1 %vm190_vm1, %v412_v35 }
  0x90   : > { %v210_v36 = vpop.f32.mrf.mxu0 }
  0x92   : > { %v215_v37 = vpop.f32.mrf.mxu1 }
  0x96   : > { %v337_v38 = vpop.f32.mrf.mxu3 }
  0x98   : > { %v212_v39 = vpop.f32.mrf.mxu0 }
  0x9a   : > { %v217_v40 = vpop.f32.mrf.mxu1 }
  0x9e   : > { %v293_v41 = vpop.f32.mrf.mxu2  ;;  %v339_v42 = vpop.f32.mrf.mxu3 }
  0xa0   : > { %v381_v43 = vpop.f32.mrf.mxu0 }
  0xa2   : > { %v245_v44 = vpop.f32.mrf.mxu1 }
  0xa3   : > { %v246_v53 = vadd.f32 %v245_v44, %v210_v36 }
  0xa5   : > { %v302_v57 = vadd.f32 %v293_v41, %v246_v53 }
  0xa6   : > { %v295_v45 = vpop.f32.mrf.mxu2  ;;  %v342_v46 = vpop.f32.mrf.mxu3 }
  0xa7   : > { %v346_v60 = vadd.f32 %v337_v38, %v302_v57 }
  0xa8   : > { %v383_v47 = vpop.f32.mrf.mxu0 }
  0xa9   : > { %v390_v1 = vadd.f32 %v381_v43, %v346_v60 }
  0xaa   : > { %v247_v48 = vpop.f32.mrf.mxu1 }
  0xab   : > { %v248_v59 = vadd.f32 %v247_v48, %v212_v39 }
  0xad   : > { %v303_v0 = vadd.f32 %v295_v45, %v248_v59 }
  0xae   : > { %v298_v49 = vpop.f32.mrf.mxu2  ;;  %v344_v50 = vpop.f32.mrf.mxu3 }
  0xaf   : > { %v347_v6 = vadd.f32 %v339_v42, %v303_v0 }
  0xb0   : > { %v386_v51 = vpop.f32.mrf.mxu0 }
  0xb1   : > { %v391_v14 = vadd.f32 %v383_v47, %v347_v6 }
  0xb2   : > { %v250_v52 = vpop.f32.mrf.mxu1 }
  0xb3   : > { %v251_v4 = vadd.f32 %v250_v52, %v215_v37 }
  0xb5   : > { %v304_v12 = vadd.f32 %v298_v49, %v251_v4 }
  0xb6   : > { %v300_v54 = vpop.f32.mrf.mxu2  ;;  %v558_v55 = vpop.f32.mrf.mxu3 }
  0xb7   : > { %v348_v20 = vadd.f32 %v342_v46, %v304_v12 }
  0xb8   : > { %v388_v56 = vpop.f32.mrf.mxu0 }
  0xb9   : > { %v392_v28 = vadd.f32 %v386_v51, %v348_v20 }
  0xba   : > { %v252_v58 = vpop.f32.mrf.mxu1 }
  0xbe   : > { %v495_v61 = vpop.f32.mrf.mxu2  ;;  %v560_v62 = vpop.f32.mrf.mxu3 }
  0xc0   : > { %v598_v63 = vpop.f32.mrf.mxu0 }
  0xc2   : > { %v431_v2 = vpop.f32.mrf.mxu1 }
  0xc3   : > { %v440_v3 = vadd.f32 %v431_v2, %v390_v1 }
  0xc5   : > { %v504_v5 = vadd.f32 %v495_v61, %v440_v3 }
  0xc6   : > { %v497_v7 = vpop.f32.mrf.mxu2  ;;  %v563_v8 = vpop.f32.mrf.mxu3 }
  0xc7   : > { %v567_v9 = vadd.f32 %v558_v55, %v504_v5 }
  0xc8   : > { %v600_v11 = vpop.f32.mrf.mxu0 }
  0xc9   : > { %v607_v13 = vadd.f32 %v598_v63, %v567_v9 }
  0xca   : > { %v433_v15 = vpop.f32.mrf.mxu1 }
  0xcb   : > { %v614_v16 = vadd.f32 %v779_v10, %v607_v13  ;;  %v441_v17 = vadd.f32 %v433_v15, %v391_v14 }
  0xcd   : > { %v617_v18 = vmax.f32 %v614_v16, 0.0  ;;  %v505_v19 = vadd.f32 %v497_v7, %v441_v17 }
  0xce   : > { %v500_v21 = vpop.f32.mrf.mxu2  ;;  %v565_v23 = vpop.f32.mrf.mxu3 }
  0xcf   : > { %v620_v24 = vpack.c.bf16 %v617_v18, %v617_v18  ;;  %v568_v25 = vadd.f32 %v560_v62, %v505_v19 }
  0xd0   : > { %v603_v26 = vpop.f32.mrf.mxu0 }
  0xd1   : > { %624 = vst.msk [vmem:[%s170_s16] sm:$0xf] %vm623_vm5, %v620_v24  ;;  %v608_v27 = vadd.f32 %v600_v11, %v568_v25 }
  0xd2   : > { %v436_v29 = vpop.f32.mrf.mxu1 }
  0xd3   : > { %v615_v30 = vadd.f32 %v779_v10, %v608_v27  ;;  %v442_v31 = vadd.f32 %v436_v29, %v392_v28 }
  0xd5   : > { %v618_v32 = vmax.f32 %v615_v30, 0.0  ;;  %v506_v33 = vadd.f32 %v500_v21, %v442_v31 }
  0xd6   : > { %v502_v34 = vpop.f32.mrf.mxu2 }
  0xd7   : > { %v621_v22 = vpack.c.bf16 %v618_v32, %v618_v32  ;;  %v569_v35 = vadd.f32 %v563_v8, %v506_v33 }
  0xd8   : > { %v605_v36 = vpop.f32.mrf.mxu0 }
  0xd9   : > { %625 = vst.msk [vmem:[%s170_s16 + $0x4] sm:$0xf] %vm623_vm5, %v621_v22  ;;  %v609_v37 = vadd.f32 %v603_v26, %v569_v35 }
  0xda   : > { %v438_v38 = vpop.f32.mrf.mxu1 }
  0xdb   : > { %v616_v39 = vadd.f32 %v779_v10, %v609_v37 }
  0xdd   : > { %v619_v40 = vmax.f32 %v616_v39, 0.0 }
  0xdf   : > { %v622_v41 = vpack.c.bf16 %v619_v40, %v619_v40 }
  0xe1   : > { %627 = vst.msk [vmem:[%s170_s16 + $0x8] sm:$0x3] %vm626_vm6, %v622_v41 }
  0xe2 PF: > { %s13_s12 = sadd.s32 1, %s786_s12  }
  0xe3   : > { %p10_p4 = scmp.ge.s32.totalorder %s13_s12, 4  }
  0xe5   :  { %12 = sbr.rel (!%p10_p4) target bundleno = 1 (0x1), region = 73 }

</bundles_post_ra>
